<compile_context>
chip_gen: v7x
topology: tpu7x:2x2x1
jax: 0.10.0
libtpu: 0.0.40
codegen_flags: <defaults>
</compile_context>

<pallas_src>
import functools

import jax
import jax.numpy as jnp
from jax import lax
from jax.experimental import pallas as pl
from jax.experimental.pallas import tpu as pltpu

BN_EPS = 1e-5
_W_OFF = 8      # 8-aligned sublane offset of the valid data inside the padded scratch
_W_EXTRA = 16   # scratch width = W + _W_EXTRA (zero border at cols _W_OFF-1 and _W_OFF+W)


# --------------------------- in-kernel building blocks ---------------------------

def _pw(x2d, w_ref, b_ref):
    """1x1 conv (MXU matmul) + folded-BN bias + ReLU; f32 accumulate and epilogue."""
    y = jnp.dot(x2d, w_ref[...], preferred_element_type=jnp.float32)
    return jnp.maximum(y + b_ref[...], 0.0)


def _dw3x3(y3, pad_ref, w_ref, b_ref, stride):
    """3x3 depthwise conv (padding=1, given stride) + folded-BN bias (VPU, f32).

    y3:      (H, W, C) f32 value (the conv input).
    pad_ref: (H + 2, W + _W_EXTRA, C) f32 VMEM scratch; the zero border is built here,
             so no host-side jnp.pad / extra HBM pass is needed.
    w_ref:   (3, 3, 1, C) folded depthwise weights; b_ref: (1, C) bias.
    """
    H, W, C = y3.shape
    ho = (H - 1) // stride + 1
    wo = (W - 1) // stride + 1
    pad_ref[...] = jnp.zeros(pad_ref.shape, pad_ref.dtype)
    # Valid rows at [1, H+1); valid cols at [_W_OFF, _W_OFF + W) (8-aligned store).
    pad_ref[1:H + 1, _W_OFF:_W_OFF + W, :] = y3
    acc = jnp.zeros((ho, wo, C), jnp.float32)
    for kh in range(3):
        for kw in range(3):
            col0 = _W_OFF - 1 + kw
            if stride == 1:
                patch = pad_ref[kh:kh + ho, col0:col0 + wo, :]
            else:
                patch = pad_ref[pl.ds(kh, ho, stride=stride),
                                pl.ds(col0, wo, stride=stride), :]
            acc = acc + patch * w_ref[kh, kw]
    return acc + b_ref[...]


# --------------------------------- fused kernels ---------------------------------

def _block_stride1_kernel(x_ref, w1_ref, b1_ref, wd_ref, bd_ref, w2_ref, b2_ref,
                          o_ref, pad_ref):
    """branch2 of a stride-1 block: pw1 -> dw3x3 -> pw2, fully resident in VMEM."""
    _, H, W, cin = x_ref.shape
    bf = w1_ref.shape[1]
    xm = x_ref[0].reshape(H * W, cin)
    y = _pw(xm, w1_ref, b1_ref)                                   # (H*W, bf) f32
    z = _dw3x3(y.reshape(H, W, bf), pad_ref, wd_ref, bd_ref, stride=1)
    o = _pw(z.reshape(H * W, bf).astype(w2_ref.dtype), w2_ref, b2_ref)
    o_ref[0] = o.astype(o_ref.dtype)


def _block_stride2_kernel(x_ref,
                          wd1_ref, bd1_ref, wp1_ref, bp1_ref,        # branch1 params
                          w21_ref, b21_ref, wd2_ref, bd2_ref, w22_ref, b22_ref,
                          o1_ref, o2_ref, pad1_ref, pad2_ref, *, stride):
    """stride>1 block: both branches computed from a single HBM read of x."""
    _, H, W, cin = x_ref.shape
    x3 = x_ref[0]                                                  # (H, W, cin)
    # branch1: dw3x3(stride) -> pw
    z1 = _dw3x3(x3.astype(jnp.float32), pad1_ref, wd1_ref, bd1_ref, stride)
    ho, wo, _ = z1.shape
    o1 = _pw(z1.reshape(ho * wo, cin).astype(wp1_ref.dtype), wp1_ref, bp1_ref)
    o1_ref[0] = o1.astype(o1_ref.dtype)
    # branch2: pw1 -> dw3x3(stride) -> pw2
    bf = w21_ref.shape[1]
    y = _pw(x3.reshape(H * W, cin), w21_ref, b21_ref)
    z2 = _dw3x3(y.reshape(H, W, bf), pad2_ref, wd2_ref, bd2_ref, stride)
    o2 = _pw(z2.reshape(ho * wo, bf).astype(w22_ref.dtype), w22_ref, b22_ref)
    o2_ref[0] = o2.astype(o2_ref.dtype)


# --------------------------------- pallas wrappers ---------------------------------

def _rep_spec(shape):
    """BlockSpec for a small parameter replicated across all grid steps."""
    return pl.BlockSpec(shape, lambda b, _z=(0,) * len(shape): _z)


def _round_up(v, m):
    return -(-v // m) * m


def _padded_bytes(shape, dtype):
    """Approximate VMEM footprint of one buffer after (8, 128) tile padding."""
    itemsize = jnp.dtype(dtype).itemsize
    dims = list(shape)
    dims[-1] = _round_up(dims[-1], 128)
    if len(dims) >= 2:
        dims[-2] = _round_up(dims[-2], 8)
    n = 1
    for d in dims:
        n *= d
    return n * itemsize


def _vmem_limit_bytes(io_blocks, scratch_blocks):
    """Double-buffered I/O blocks + scratch + headroom, capped at v7x's 64 MiB."""
    total = 2 * sum(_padded_bytes(s, d) for s, d in io_blocks)
    total += sum(_padded_bytes(s, d) for s, d in scratch_blocks)
    return int(min(64 * 1024 * 1024, max(16 * 1024 * 1024, total + 4 * 1024 * 1024)))


def shuffle_block_stride1_branch2(x2, p, compute_dtype):
    """Fused pw1 -> dw3x3 -> pw2 for the stride-1 branch2. x2: (B, H, W, bf) NHWC."""
    B, H, W, cb = x2.shape
    bf = p['pw1_w'].shape[1]
    x2c = x2.astype(compute_dtype)
    io_blocks = [((1, H, W, cb), compute_dtype), ((1, H * W, bf), jnp.float32)]
    scratch_info = [((H + 2, W + _W_EXTRA, bf), jnp.float32)]
    out = pl.pallas_call(
        _block_stride1_kernel,
        out_shape=jax.ShapeDtypeStruct((B, H * W, bf), jnp.float32),
        grid=(B,),
        in_specs=[
            pl.BlockSpec((1, H, W, cb), lambda b: (b, 0, 0, 0)),
            _rep_spec(p['pw1_w'].shape), _rep_spec(p['pw1_b'].shape),
            _rep_spec(p['dw_w'].shape), _rep_spec(p['dw_b'].shape),
            _rep_spec(p['pw2_w'].shape), _rep_spec(p['pw2_b'].shape),
        ],
        out_specs=pl.BlockSpec((1, H * W, bf), lambda b: (b, 0, 0)),
        scratch_shapes=[pltpu.VMEM((H + 2, W + _W_EXTRA, bf), jnp.float32)],
        compiler_params=pltpu.CompilerParams(
            dimension_semantics=("parallel",),
            vmem_limit_bytes=_vmem_limit_bytes(io_blocks, scratch_info),
        ),
    )(x2c, p['pw1_w'], p['pw1_b'], p['dw_w'], p['dw_b'], p['pw2_w'], p['pw2_b'])
    return out.reshape(B, H, W, bf)


def shuffle_block_stride2(x, kp, stride, compute_dtype):
    """Fused stride>1 block (both branches). x: (B, H, W, Cin) NHWC."""
    B, H, W, cin = x.shape
    p1, p2 = kp['branch1'], kp['branch2']
    bf = p2['pw1_w'].shape[1]
    ho = (H - 1) // stride + 1
    wo = (W - 1) // stride + 1
    xc = x.astype(compute_dtype)
    io_blocks = [((1, H, W, cin), compute_dtype),
                 ((1, ho * wo, bf), jnp.float32),
                 ((1, ho * wo, bf), jnp.float32)]
    scratch_info = [((H + 2, W + _W_EXTRA, cin), jnp.float32),
                    ((H + 2, W + _W_EXTRA, bf), jnp.float32)]
    o1, o2 = pl.pallas_call(
        functools.partial(_block_stride2_kernel, stride=stride),
        out_shape=(jax.ShapeDtypeStruct((B, ho * wo, bf), jnp.float32),
                   jax.ShapeDtypeStruct((B, ho * wo, bf), jnp.float32)),
        grid=(B,),
        in_specs=[
            pl.BlockSpec((1, H, W, cin), lambda b: (b, 0, 0, 0)),
            _rep_spec(p1['dw_w'].shape), _rep_spec(p1['dw_b'].shape),
            _rep_spec(p1['pw_w'].shape), _rep_spec(p1['pw_b'].shape),
            _rep_spec(p2['pw1_w'].shape), _rep_spec(p2['pw1_b'].shape),
            _rep_spec(p2['dw_w'].shape), _rep_spec(p2['dw_b'].shape),
            _rep_spec(p2['pw2_w'].shape), _rep_spec(p2['pw2_b'].shape),
        ],
        out_specs=(pl.BlockSpec((1, ho * wo, bf), lambda b: (b, 0, 0)),
                   pl.BlockSpec((1, ho * wo, bf), lambda b: (b, 0, 0))),
        scratch_shapes=[pltpu.VMEM((H + 2, W + _W_EXTRA, cin), jnp.float32),
                        pltpu.VMEM((H + 2, W + _W_EXTRA, bf), jnp.float32)],
        compiler_params=pltpu.CompilerParams(
            dimension_semantics=("parallel",),
            vmem_limit_bytes=_vmem_limit_bytes(io_blocks, scratch_info),
        ),
    )(xc,
      p1['dw_w'], p1['dw_b'], p1['pw_w'], p1['pw_b'],
      p2['pw1_w'], p2['pw1_b'], p2['dw_w'], p2['dw_b'], p2['pw2_w'], p2['pw2_b'])
    return o1.reshape(B, ho, wo, bf), o2.reshape(B, ho, wo, bf)


# ------------------------------ parameter preparation ------------------------------

def _fold_pw(w, bn):
    scale, shift = bn
    return w * scale[None, :], shift.reshape(1, -1)


def _fold_dw(w, bn):  # w: (3, 3, 1, C)
    scale, shift = bn
    return w * scale.reshape(1, 1, 1, -1), shift.reshape(1, -1)


def prepare_kernel_params(params, compute_dtype=jnp.float32):
    """Fold BN scale into the conv weights; cast the MXU (pointwise) weights."""
    out = {}
    if 'branch1' in params:
        p = params['branch1']
        dw_w, dw_b = _fold_dw(p['dw_w'], p['dw_bn'])
        pw_w, pw_b = _fold_pw(p['pw_w'], p['pw_bn'])
        out['branch1'] = dict(dw_w=dw_w, dw_b=dw_b,
                              pw_w=pw_w.astype(compute_dtype), pw_b=pw_b)
    p = params['branch2']
    w1, b1 = _fold_pw(p['pw1_w'], p['pw1_bn'])
    dw_w, dw_b = _fold_dw(p['dw_w'], p['dw_bn'])
    w2, b2 = _fold_pw(p['pw2_w'], p['pw2_bn'])
    out['branch2'] = dict(pw1_w=w1.astype(compute_dtype), pw1_b=b1,
                          dw_w=dw_w, dw_b=dw_b,
                          pw2_w=w2.astype(compute_dtype), pw2_b=b2)
    return out


# ----------------------------------- forward pass -----------------------------------

def channel_shuffle_nchw(x, groups):
    b, c, h, w = x.shape
    x = x.reshape(b, groups, c // groups, h, w)
    x = jnp.transpose(x, (0, 2, 1, 3, 4))
    return x.reshape(b, c, h, w)


def inverted_residual_forward(x_nchw, params, stride, *, compute_dtype=jnp.float32):
    kp = prepare_kernel_params(params, compute_dtype)
    x = jnp.transpose(x_nchw, (0, 2, 3, 1))          # NCHW -> NHWC (f32)
    if stride == 1:
        bf = x.shape[-1] // 2
        a = x[..., :bf]                               # identity half (exact, f32)
        b = shuffle_block_stride1_branch2(x[..., bf:], kp['branch2'], compute_dtype)
    else:
        a, b = shuffle_block_stride2(x, kp, stride, compute_dtype)
    # concat + channel_shuffle(groups=2) == per-channel interleave of the two halves.
    out = jnp.stack([a, b], axis=-1).reshape(a.shape[:-1] + (2 * a.shape[-1],))
    return jnp.transpose(out, (0, 3, 1, 2))           # NHWC -> NCHW


# --------------------------- deterministic parameter init ---------------------------

def _fold_bn(key, c):
    k1, k2, k3, k4 = jax.random.split(key, 4)
    gamma = 1.0 + 0.1 * jax.random.normal(k1, (c,), jnp.float32)
    beta = 0.1 * jax.random.normal(k2, (c,), jnp.float32)
    mean = 0.1 * jax.random.normal(k3, (c,), jnp.float32)
    var = 1.0 + 0.5 * jax.random.uniform(k4, (c,), jnp.float32)
    scale = gamma / jnp.sqrt(var + BN_EPS)
    shift = beta - mean * scale
    return scale, shift


def init_params(inp, oup, stride, key):
    if not 1 <= stride <= 3:
        raise ValueError('illegal stride value')
    bf = oup // 2
    assert stride != 1 or inp == bf * 2
    keys = jax.random.split(key, 10)
    params = {}
    if stride > 1:
        params['branch1'] = {
            'dw_w': 0.1 * jax.random.normal(keys[0], (3, 3, 1, inp), jnp.float32),
            'dw_bn': _fold_bn(keys[1], inp),
            'pw_w': 0.1 * jax.random.normal(keys[2], (inp, bf), jnp.float32),
            'pw_bn': _fold_bn(keys[3], bf),
        }
    c2_in = inp if stride > 1 else bf
    params['branch2'] = {
        'pw1_w': 0.1 * jax.random.normal(keys[4], (c2_in, bf), jnp.float32),
        'pw1_bn': _fold_bn(keys[5], bf),
        'dw_w': 0.1 * jax.random.normal(keys[6], (3, 3, 1, bf), jnp.float32),
        'dw_bn': _fold_bn(keys[7], bf),
        'pw2_w': 0.1 * jax.random.normal(keys[8], (bf, bf), jnp.float32),
        'pw2_bn': _fold_bn(keys[9], bf),
    }
    return params


# --------------------------- pure-JAX reference (checking) ---------------------------

def _ref_pw(x, w, scale, shift):
    y = jnp.einsum('bhwi,io->bhwo', x, w) * scale + shift
    return jnp.maximum(y, 0.0)


def _ref_dw(x, w, scale, shift, stride):
    c = x.shape[-1]
    y = lax.conv_general_dilated(x, w, window_strides=(stride, stride),
                                 padding=((1, 1), (1, 1)),
                                 dimension_numbers=('NHWC', 'HWIO', 'NHWC'),
                                 feature_group_count=c)
    return y * scale + shift


def ref_forward(x_nchw, params, stride):
    x = jnp.transpose(x_nchw, (0, 2, 3, 1))

    def rb2(z):
        p = params['branch2']
        y = _ref_pw(z, p['pw1_w'], *p['pw1_bn'])
        y = _ref_dw(y, p['dw_w'], *p['dw_bn'], stride=stride)
        return _ref_pw(y, p['pw2_w'], *p['pw2_bn'])

    if stride == 1:
        bf = x.shape[-1] // 2
        out = jnp.concatenate([x[..., :bf], rb2(x[..., bf:])], axis=-1)
    else:
        p1 = params['branch1']
        y1 = _ref_dw(x, p1['dw_w'], *p1['dw_bn'], stride=stride)
        y1 = _ref_pw(y1, p1['pw_w'], *p1['pw_bn'])
        out = jnp.concatenate([y1, rb2(x)], axis=-1)
    return channel_shuffle_nchw(jnp.transpose(out, (0, 3, 1, 2)), 2)


# ---------------------------------------- main ----------------------------------------

if __name__ == "__main__":
    key = jax.random.PRNGKey(0)
    kx1, kp1, kx2, kp2 = jax.random.split(key, 4)

    B, C, H, W = 2, 8, 16, 16

    # Case 1: stride=1 (inp == oup), like the module's first doctest (smaller spatial).
    x1 = jax.random.normal(kx1, (B, C, H, W), jnp.float32)
    params1 = init_params(C, C, 1, kp1)
    out1 = jax.block_until_ready(inverted_residual_forward(x1, params1, 1))
    assert out1.shape == (B, C, H, W), out1.shape
    ref1 = jax.block_until_ready(ref_forward(x1, params1, 1))
    err1 = float(jnp.max(jnp.abs(out1 - ref1)))
    assert err1 < 1e-3, err1

    # Case 2: stride=2 (oup == 2*inp), like the module's second doctest.
    x2 = jax.random.normal(kx2, (B, C, H, W), jnp.float32)
    params2 = init_params(C, 2 * C, 2, kp2)
    out2 = jax.block_until_ready(inverted_residual_forward(x2, params2, 2))
    assert out2.shape == (B, 2 * C, H // 2, W // 2), out2.shape
    ref2 = jax.block_until_ready(ref_forward(x2, params2, 2))
    err2 = float(jnp.max(jnp.abs(out2 - ref2)))
    assert err2 < 1e-3, err2

    # bf16 compute path (MXU matmuls in bf16, f32 accumulate/epilogue): loose check.
    out1_bf16 = jax.block_until_ready(
        inverted_residual_forward(x1, params1, 1, compute_dtype=jnp.bfloat16))
    err_bf16 = float(jnp.max(jnp.abs(out1_bf16 - ref1)))
    assert err_bf16 < 1e-1, err_bf16

    print("KERNEL_OK")
</pallas_src>

<mosaic_0001>
module attributes {stable_mosaic.version = 11 : i64} {
  func.func @_block_stride1_kernel(%arg0: i32, %arg1: memref<1x16x16x4xf32, #tpu.memory_space<vmem>>, %arg2: memref<4x4xf32, #tpu.memory_space<vmem>>, %arg3: memref<1x4xf32, #tpu.memory_space<vmem>>, %arg4: memref<3x3x1x4xf32, #tpu.memory_space<vmem>>, %arg5: memref<1x4xf32, #tpu.memory_space<vmem>>, %arg6: memref<4x4xf32, #tpu.memory_space<vmem>>, %arg7: memref<1x4xf32, #tpu.memory_space<vmem>>, %arg8: memref<1x256x4xf32, #tpu.memory_space<vmem>>, %arg9: memref<18x32x4xf32, #tpu.memory_space<vmem>>) attributes {dimension_semantics = [#tpu.dimension_semantics<parallel>], iteration_bounds = array<i64: 2>, scalar_prefetch = 0 : i64, scratch_operands = 1 : i64, tpu.core_type = #tpu.core_type<tc>, window_params = [{transform_indices = @transform_0, window_bounds = array<i64: 1, 16, 16, 4>}, {pipeline_mode = #tpu.pipeline_mode<synchronous>, transform_indices = @transform_1, window_bounds = array<i64: 4, 4>}, {pipeline_mode = #tpu.pipeline_mode<synchronous>, transform_indices = @transform_2, window_bounds = array<i64: 1, 4>}, {pipeline_mode = #tpu.pipeline_mode<synchronous>, transform_indices = @transform_3, window_bounds = array<i64: 3, 3, 1, 4>}, {pipeline_mode = #tpu.pipeline_mode<synchronous>, transform_indices = @transform_4, window_bounds = array<i64: 1, 4>}, {pipeline_mode = #tpu.pipeline_mode<synchronous>, transform_indices = @transform_5, window_bounds = array<i64: 4, 4>}, {pipeline_mode = #tpu.pipeline_mode<synchronous>, transform_indices = @transform_6, window_bounds = array<i64: 1, 4>}, {transform_indices = @transform_7, window_bounds = array<i64: 1, 256, 4>}]} {
    %c0 = arith.constant 0 : index
    %c0_0 = arith.constant 0 : index
    %c0_1 = arith.constant 0 : index
    %c0_2 = arith.constant 0 : index
    %0 = vector.load %arg1[%c0, %c0_0, %c0_1, %c0_2] : memref<1x16x16x4xf32, #tpu.memory_space<vmem>>, vector<1x16x16x4xf32>
    %1 = vector.shape_cast %0 : vector<1x16x16x4xf32> to vector<16x16x4xf32>
    %2 = vector.shape_cast %1 : vector<16x16x4xf32> to vector<256x4xf32>
    %c0_3 = arith.constant 0 : index
    %c0_4 = arith.constant 0 : index
    %3 = vector.load %arg2[%c0_3, %c0_4] : memref<4x4xf32, #tpu.memory_space<vmem>>, vector<4x4xf32>
    %cst = arith.constant dense<0.000000e+00> : vector<256x4xf32>
    %4 = tpu.matmul %2, %3, %cst {dimension_numbers = #tpu.dot_dimension_numbers<[1], [0], [0], [1], [0, 0, 1, 1], [], []>} : vector<256x4xf32>, vector<4x4xf32>, vector<256x4xf32> -> vector<256x4xf32>
    %c0_5 = arith.constant 0 : index
    %c0_6 = arith.constant 0 : index
    %5 = vector.load %arg3[%c0_5, %c0_6] : memref<1x4xf32, #tpu.memory_space<vmem>>, vector<1x4xf32>
    %6 = vector.broadcast %5 : vector<1x4xf32> to vector<256x4xf32>
    %7 = arith.addf %4, %6 : vector<256x4xf32>
    %cst_7 = arith.constant 0.000000e+00 : f32
    %8 = vector.broadcast %cst_7 : f32 to vector<256x4xf32>
    %9 = arith.maximumf %7, %8 : vector<256x4xf32>
    %10 = vector.shape_cast %9 : vector<256x4xf32> to vector<16x16x4xf32>
    %cst_8 = arith.constant 0.000000e+00 : f32
    %11 = vector.broadcast %cst_8 : f32 to vector<18x32x4xf32>
    %c0_9 = arith.constant 0 : index
    %c0_10 = arith.constant 0 : index
    %c0_11 = arith.constant 0 : index
    %12 = vector.load %arg9[%c0_9, %c0_10, %c0_11] : memref<18x32x4xf32, #tpu.memory_space<vmem>>, vector<18x32x4xf32>
    tpu.vector_store %arg9[%c0_9, %c0_10, %c0_11], %11 {strides = array<i32>} : memref<18x32x4xf32, #tpu.memory_space<vmem>>, vector<18x32x4xf32>,
    %c1 = arith.constant 1 : index
    %c8 = arith.constant 8 : index
    %c0_12 = arith.constant 0 : index
    %13 = vector.load %arg9[%c1, %c8, %c0_12] : memref<18x32x4xf32, #tpu.memory_space<vmem>>, vector<16x16x4xf32>
    tpu.vector_store %arg9[%c1, %c8, %c0_12], %10 {strides = array<i32>} : memref<18x32x4xf32, #tpu.memory_space<vmem>>, vector<16x16x4xf32>,
    %cst_13 = arith.constant 0.000000e+00 : f32
    %14 = vector.broadcast %cst_13 : f32 to vector<16x16x4xf32>
    %c0_14 = arith.constant 0 : index
    %c7 = arith.constant 7 : index
    %c0_15 = arith.constant 0 : index
    %15 = vector.load %arg9[%c0_14, %c7, %c0_15] : memref<18x32x4xf32, #tpu.memory_space<vmem>>, vector<16x16x4xf32>
    %c0_16 = arith.constant 0 : index
    %c0_17 = arith.constant 0 : index
    %c0_18 = arith.constant 0 : index
    %c0_19 = arith.constant 0 : index
    %16 = vector.load %arg4[%c0_16, %c0_17, %c0_18, %c0_19] : memref<3x3x1x4xf32, #tpu.memory_space<vmem>>, vector<1x1x1x4xf32>
    %17 = vector.shape_cast %16 : vector<1x1x1x4xf32> to vector<1x4xf32>
    %18 = vector.shape_cast %17 : vector<1x4xf32> to vector<1x1x4xf32>
    %19 = vector.broadcast %18 : vector<1x1x4xf32> to vector<16x16x4xf32>
    %20 = arith.mulf %15, %19 : vector<16x16x4xf32>
    %21 = arith.addf %14, %20 : vector<16x16x4xf32>
    %c0_20 = arith.constant 0 : index
    %c8_21 = arith.constant 8 : index
    %c0_22 = arith.constant 0 : index
    %22 = vector.load %arg9[%c0_20, %c8_21, %c0_22] : memref<18x32x4xf32, #tpu.memory_space<vmem>>, vector<16x16x4xf32>
    %c0_23 = arith.constant 0 : index
    %c1_24 = arith.constant 1 : index
    %c0_25 = arith.constant 0 : index
    %c0_26 = arith.constant 0 : index
    %23 = vector.load %arg4[%c0_23, %c1_24, %c0_25, %c0_26] : memref<3x3x1x4xf32, #tpu.memory_space<vmem>>, vector<1x1x1x4xf32>
    %24 = vector.shape_cast %23 : vector<1x1x1x4xf32> to vector<1x4xf32>
    %25 = vector.shape_cast %24 : vector<1x4xf32> to vector<1x1x4xf32>
    %26 = vector.broadcast %25 : vector<1x1x4xf32> to vector<16x16x4xf32>
    %27 = arith.mulf %22, %26 : vector<16x16x4xf32>
    %28 = arith.addf %21, %27 : vector<16x16x4xf32>
    %c0_27 = arith.constant 0 : index
    %c9 = arith.constant 9 : index
    %c0_28 = arith.constant 0 : index
    %29 = vector.load %arg9[%c0_27, %c9, %c0_28] : memref<18x32x4xf32, #tpu.memory_space<vmem>>, vector<16x16x4xf32>
    %c0_29 = arith.constant 0 : index
    %c2 = arith.constant 2 : index
    %c0_30 = arith.constant 0 : index
    %c0_31 = arith.constant 0 : index
    %30 = vector.load %arg4[%c0_29, %c2, %c0_30, %c0_31] : memref<3x3x1x4xf32, #tpu.memory_space<vmem>>, vector<1x1x1x4xf32>
    %31 = vector.shape_cast %30 : vector<1x1x1x4xf32> to vector<1x4xf32>
    %32 = vector.shape_cast %31 : vector<1x4xf32> to vector<1x1x4xf32>
    %33 = vector.broadcast %32 : vector<1x1x4xf32> to vector<16x16x4xf32>
    %34 = arith.mulf %29, %33 : vector<16x16x4xf32>
    %35 = arith.addf %28, %34 : vector<16x16x4xf32>
    %c1_32 = arith.constant 1 : index
    %c7_33 = arith.constant 7 : index
    %c0_34 = arith.constant 0 : index
    %36 = vector.load %arg9[%c1_32, %c7_33, %c0_34] : memref<18x32x4xf32, #tpu.memory_space<vmem>>, vector<16x16x4xf32>
    %c1_35 = arith.constant 1 : index
    %c0_36 = arith.constant 0 : index
    %c0_37 = arith.constant 0 : index
    %c0_38 = arith.constant 0 : index
    %37 = vector.load %arg4[%c1_35, %c0_36, %c0_37, %c0_38] : memref<3x3x1x4xf32, #tpu.memory_space<vmem>>, vector<1x1x1x4xf32>
    %38 = vector.shape_cast %37 : vector<1x1x1x4xf32> to vector<1x4xf32>
    %39 = vector.shape_cast %38 : vector<1x4xf32> to vector<1x1x4xf32>
    %40 = vector.broadcast %39 : vector<1x1x4xf32> to vector<16x16x4xf32>
    %41 = arith.mulf %36, %40 : vector<16x16x4xf32>
    %42 = arith.addf %35, %41 : vector<16x16x4xf32>
    %c1_39 = arith.constant 1 : index
    %c8_40 = arith.constant 8 : index
    %c0_41 = arith.constant 0 : index
    %43 = vector.load %arg9[%c1_39, %c8_40, %c0_41] : memref<18x32x4xf32, #tpu.memory_space<vmem>>, vector<16x16x4xf32>
    %c1_42 = arith.constant 1 : index
    %c1_43 = arith.constant 1 : index
    %c0_44 = arith.constant 0 : index
    %c0_45 = arith.constant 0 : index
    %44 = vector.load %arg4[%c1_42, %c1_43, %c0_44, %c0_45] : memref<3x3x1x4xf32, #tpu.memory_space<vmem>>, vector<1x1x1x4xf32>
    %45 = vector.shape_cast %44 : vector<1x1x1x4xf32> to vector<1x4xf32>
    %46 = vector.shape_cast %45 : vector<1x4xf32> to vector<1x1x4xf32>
    %47 = vector.broadcast %46 : vector<1x1x4xf32> to vector<16x16x4xf32>
    %48 = arith.mulf %43, %47 : vector<16x16x4xf32>
    %49 = arith.addf %42, %48 : vector<16x16x4xf32>
    %c1_46 = arith.constant 1 : index
    %c9_47 = arith.constant 9 : index
    %c0_48 = arith.constant 0 : index
    %50 = vector.load %arg9[%c1_46, %c9_47, %c0_48] : memref<18x32x4xf32, #tpu.memory_space<vmem>>, vector<16x16x4xf32>
    %c1_49 = arith.constant 1 : index
    %c2_50 = arith.constant 2 : index
    %c0_51 = arith.constant 0 : index
    %c0_52 = arith.constant 0 : index
    %51 = vector.load %arg4[%c1_49, %c2_50, %c0_51, %c0_52] : memref<3x3x1x4xf32, #tpu.memory_space<vmem>>, vector<1x1x1x4xf32>
    %52 = vector.shape_cast %51 : vector<1x1x1x4xf32> to vector<1x4xf32>
    %53 = vector.shape_cast %52 : vector<1x4xf32> to vector<1x1x4xf32>
    %54 = vector.broadcast %53 : vector<1x1x4xf32> to vector<16x16x4xf32>
    %55 = arith.mulf %50, %54 : vector<16x16x4xf32>
    %56 = arith.addf %49, %55 : vector<16x16x4xf32>
    %c2_53 = arith.constant 2 : index
    %c7_54 = arith.constant 7 : index
    %c0_55 = arith.constant 0 : index
    %57 = vector.load %arg9[%c2_53, %c7_54, %c0_55] : memref<18x32x4xf32, #tpu.memory_space<vmem>>, vector<16x16x4xf32>
    %c2_56 = arith.constant 2 : index
    %c0_57 = arith.constant 0 : index
    %c0_58 = arith.constant 0 : index
    %c0_59 = arith.constant 0 : index
    %58 = vector.load %arg4[%c2_56, %c0_57, %c0_58, %c0_59] : memref<3x3x1x4xf32, #tpu.memory_space<vmem>>, vector<1x1x1x4xf32>
    %59 = vector.shape_cast %58 : vector<1x1x1x4xf32> to vector<1x4xf32>
    %60 = vector.shape_cast %59 : vector<1x4xf32> to vector<1x1x4xf32>
    %61 = vector.broadcast %60 : vector<1x1x4xf32> to vector<16x16x4xf32>
    %62 = arith.mulf %57, %61 : vector<16x16x4xf32>
    %63 = arith.addf %56, %62 : vector<16x16x4xf32>
    %c2_60 = arith.constant 2 : index
    %c8_61 = arith.constant 8 : index
    %c0_62 = arith.constant 0 : index
    %64 = vector.load %arg9[%c2_60, %c8_61, %c0_62] : memref<18x32x4xf32, #tpu.memory_space<vmem>>, vector<16x16x4xf32>
    %c2_63 = arith.constant 2 : index
    %c1_64 = arith.constant 1 : index
    %c0_65 = arith.constant 0 : index
    %c0_66 = arith.constant 0 : index
    %65 = vector.load %arg4[%c2_63, %c1_64, %c0_65, %c0_66] : memref<3x3x1x4xf32, #tpu.memory_space<vmem>>, vector<1x1x1x4xf32>
    %66 = vector.shape_cast %65 : vector<1x1x1x4xf32> to vector<1x4xf32>
    %67 = vector.shape_cast %66 : vector<1x4xf32> to vector<1x1x4xf32>
    %68 = vector.broadcast %67 : vector<1x1x4xf32> to vector<16x16x4xf32>
    %69 = arith.mulf %64, %68 : vector<16x16x4xf32>
    %70 = arith.addf %63, %69 : vector<16x16x4xf32>
    %c2_67 = arith.constant 2 : index
    %c9_68 = arith.constant 9 : index
    %c0_69 = arith.constant 0 : index
    %71 = vector.load %arg9[%c2_67, %c9_68, %c0_69] : memref<18x32x4xf32, #tpu.memory_space<vmem>>, vector<16x16x4xf32>
    %c2_70 = arith.constant 2 : index
    %c2_71 = arith.constant 2 : index
    %c0_72 = arith.constant 0 : index
    %c0_73 = arith.constant 0 : index
    %72 = vector.load %arg4[%c2_70, %c2_71, %c0_72, %c0_73] : memref<3x3x1x4xf32, #tpu.memory_space<vmem>>, vector<1x1x1x4xf32>
    %73 = vector.shape_cast %72 : vector<1x1x1x4xf32> to vector<1x4xf32>
    %74 = vector.shape_cast %73 : vector<1x4xf32> to vector<1x1x4xf32>
    %75 = vector.broadcast %74 : vector<1x1x4xf32> to vector<16x16x4xf32>
    %76 = arith.mulf %71, %75 : vector<16x16x4xf32>
    %77 = arith.addf %70, %76 : vector<16x16x4xf32>
    %c0_74 = arith.constant 0 : index
    %c0_75 = arith.constant 0 : index
    %78 = vector.load %arg5[%c0_74, %c0_75] : memref<1x4xf32, #tpu.memory_space<vmem>>, vector<1x4xf32>
    %79 = vector.shape_cast %78 : vector<1x4xf32> to vector<1x1x4xf32>
    %80 = vector.broadcast %79 : vector<1x1x4xf32> to vector<16x16x4xf32>
    %81 = arith.addf %77, %80 : vector<16x16x4xf32>
    %82 = vector.shape_cast %81 : vector<16x16x4xf32> to vector<256x4xf32>
    %c0_76 = arith.constant 0 : index
    %c0_77 = arith.constant 0 : index
    %83 = vector.load %arg6[%c0_76, %c0_77] : memref<4x4xf32, #tpu.memory_space<vmem>>, vector<4x4xf32>
    %cst_78 = arith.constant dense<0.000000e+00> : vector<256x4xf32>
    %84 = tpu.matmul %82, %83, %cst_78 {dimension_numbers = #tpu.dot_dimension_numbers<[1], [0], [0], [1], [0, 0, 1, 1], [], []>} : vector<256x4xf32>, vector<4x4xf32>, vector<256x4xf32> -> vector<256x4xf32>
    %c0_79 = arith.constant 0 : index
    %c0_80 = arith.constant 0 : index
    %85 = vector.load %arg7[%c0_79, %c0_80] : memref<1x4xf32, #tpu.memory_space<vmem>>, vector<1x4xf32>
    %86 = vector.broadcast %85 : vector<1x4xf32> to vector<256x4xf32>
    %87 = arith.addf %84, %86 : vector<256x4xf32>
    %cst_81 = arith.constant 0.000000e+00 : f32
    %88 = vector.broadcast %cst_81 : f32 to vector<256x4xf32>
    %89 = arith.maximumf %87, %88 : vector<256x4xf32>
    %c0_82 = arith.constant 0 : index
    %c0_83 = arith.constant 0 : index
    %c0_84 = arith.constant 0 : index
    %90 = vector.load %arg8[%c0_82, %c0_83, %c0_84] : memref<1x256x4xf32, #tpu.memory_space<vmem>>, vector<1x256x4xf32>
    %91 = vector.shape_cast %90 : vector<1x256x4xf32> to vector<256x4xf32>
    %92 = vector.shape_cast %89 : vector<256x4xf32> to vector<1x256x4xf32>
    tpu.vector_store %arg8[%c0_82, %c0_83, %c0_84], %92 {strides = array<i32>} : memref<1x256x4xf32, #tpu.memory_space<vmem>>, vector<1x256x4xf32>,
    return
  }
  func.func @transform_0(%arg0: i32) -> (i32, i32, i32, i32) {
    %c0_i32 = arith.constant 0 : i32
    %c0_i32_0 = arith.constant 0 : i32
    %c0_i32_1 = arith.constant 0 : i32
    %c0_i32_2 = arith.constant 0 : i32
    return %arg0, %c0_i32, %c0_i32_0, %c0_i32_1 : i32, i32, i32, i32
  }
  func.func @transform_1(%arg0: i32) -> (i32, i32) {
    %c0_i32 = arith.constant 0 : i32
    %c0_i32_0 = arith.constant 0 : i32
    %c0_i32_1 = arith.constant 0 : i32
    return %c0_i32, %c0_i32_0 : i32, i32
  }
  func.func @transform_2(%arg0: i32) -> (i32, i32) {
    %c0_i32 = arith.constant 0 : i32
    %c0_i32_0 = arith.constant 0 : i32
    %c0_i32_1 = arith.constant 0 : i32
    return %c0_i32, %c0_i32_0 : i32, i32
  }
  func.func @transform_3(%arg0: i32) -> (i32, i32, i32, i32) {
    %c0_i32 = arith.constant 0 : i32
    %c0_i32_0 = arith.constant 0 : i32
    %c0_i32_1 = arith.constant 0 : i32
    %c0_i32_2 = arith.constant 0 : i32
    %c0_i32_3 = arith.constant 0 : i32
    return %c0_i32, %c0_i32_0, %c0_i32_1, %c0_i32_2 : i32, i32, i32, i32
  }
  func.func @transform_4(%arg0: i32) -> (i32, i32) {
    %c0_i32 = arith.constant 0 : i32
    %c0_i32_0 = arith.constant 0 : i32
    %c0_i32_1 = arith.constant 0 : i32
    return %c0_i32, %c0_i32_0 : i32, i32
  }
  func.func @transform_5(%arg0: i32) -> (i32, i32) {
    %c0_i32 = arith.constant 0 : i32
    %c0_i32_0 = arith.constant 0 : i32
    %c0_i32_1 = arith.constant 0 : i32
    return %c0_i32, %c0_i32_0 : i32, i32
  }
  func.func @transform_6(%arg0: i32) -> (i32, i32) {
    %c0_i32 = arith.constant 0 : i32
    %c0_i32_0 = arith.constant 0 : i32
    %c0_i32_1 = arith.constant 0 : i32
    return %c0_i32, %c0_i32_0 : i32, i32
  }
  func.func @transform_7(%arg0: i32) -> (i32, i32, i32) {
    %c0_i32 = arith.constant 0 : i32
    %c0_i32_0 = arith.constant 0 : i32
    %c0_i32_1 = arith.constant 0 : i32
    return %arg0, %c0_i32, %c0_i32_0 : i32, i32, i32
  }
}

</mosaic_0001>

<bundles_post_ra>
// kernel: tpu_custom_call.1
= control target key start
LH: loop header
LB: loop body
LE: loop exit
PB: predicated region body
PF: predicated region fallthrough
CT: control target
= control target key end

     0   :  { %s2541_s24 = smov 0   ;;  %s3702_s0 = inlined_call_operand.vmem [shape: f32[2,16,16,4], index: 0, kind: input, shape index: {}]   ;;  %s3703_s1 = inlined_call_operand.vmem [shape: f32[4,4], index: 1, kind: input, shape index: {}]   ;;  %s3704_s2 = inlined_call_operand.vmem [shape: f32[1,4], index: 2, kind: input, shape index: {}]   ;;  %s3705_s3 = inlined_call_operand.vmem [shape: f32[3,3,1,4], index: 3, kind: input, shape index: {}]   ;;  %s3706_s4 = inlined_call_operand.vmem [shape: f32[1,4], index: 4, kind: input, shape index: {}]   ;;  %s3707_s5 = inlined_call_operand.vmem [shape: f32[4,4], index: 5, kind: input, shape index: {}]   ;;  %s3708_s6 = inlined_call_operand.vmem [shape: f32[1,4], index: 6, kind: input, shape index: {}]   ;;  %s3709_s7 = inlined_call_operand.vmem [shape: f32[2,256,4], index: 7, kind: output, shape index: {}]  }
   0x1 LB: > { %s2208_s25 = sadd.s32 4294967295, %s2498_s24   ;;  %p2212_p0 = scmp.ge.s32.totalorder %s2498_s24, 1  ;;  %s2498_s24 = sphi %s2541_s24, %s17_s24  }
   0x2   : > { %p237_p1 = scmp.lt.s32.totalorder %s2498_s24, 3 }
   0x4   : > { %p238_p2 = pnand %p2212_p0, %p237_p1 }
   0x5   : > { %v311_v0 = vld [vmem:[%s3703_s1] sm:$0xf] (!%p238_p2)  ;;  %vm416_vm0 = vcmask (!%p238_p2), 1043456   ;;  %p269_p3 = scmp.lt.s32.totalorder (!%p238_p2), %s2208_s25, 1  ;;  %vm319_vm1 = vcmask (!%p238_p2), 31744   ;;  %v2500_v33 = vmov (!%p238_p2), 0.0  }
   0x6   : > { %241 = sbr.rel (%p238_p2) target bundleno = 626 (0x272), region = 48  ;;  %2373 = vmatprep.subr.msk.mxu0 (!%p238_p2), %vm416_vm0, %v311_v0  ;;  %683 = vst.msk [vmem:[#allocation2 + $0x30] sm:$0xff] (!%p238_p2), %vm319_vm1, %v2500_v33  ;;  %677 = vst.msk [vmem:[#allocation2] sm:$0xff] (!%p238_p2), %vm319_vm1, %v2500_v33  ;;  %v1757_v34 = vld [vmem:[%s3707_s5] sm:$0xf] (!%p238_p2) }
   0x7   : > { %2374 = vmatpush3.msk.msra.mxu0 (!%p238_p2), %vm416_vm0, %v311_v0  ;;  %678 = vst.msk [vmem:[#allocation2 + $0x8] sm:$0xff] (!%p238_p2), %vm319_vm1, %v2500_v33  ;;  %679 = vst.msk [vmem:[#allocation2 + $0x10] sm:$0xff] (!%p238_p2), %vm319_vm1, %v2500_v33  ;;  %2423 = vmatprep.subr.msk.mxu1 (!%p238_p2), %vm416_vm0, %v1757_v34  ;;  %v2780_v35 = vld [vmem:[%s3704_s2] ss:$0 sm:$0xff] (!%p238_p2)  ;;  %v2791_v42 = vld [vmem:[%s3705_s3 + $0x1] ss:$0 sm:$0xff] (!%p238_p2) }
   0x8   : > { %680 = vst.msk [vmem:[#allocation2 + $0x18] sm:$0xff] (!%p238_p2), %vm319_vm1, %v2500_v33  ;;  %681 = vst.msk [vmem:[#allocation2 + $0x20] sm:$0xff] (!%p238_p2), %vm319_vm1, %v2500_v33  ;;  %2424 = vmatpush3.msk.msra.mxu1 (!%p238_p2), %vm416_vm0, %v1757_v34  ;;  %v2786_v40 = vld [vmem:[%s3705_s3] ss:$0 sm:$0xff] (!%p238_p2)  ;;  %v2801_v54 = vld [vmem:[%s3705_s3 + $0x2] ss:$0 sm:$0xff] (!%p238_p2) }
   0x9   : > { %682 = vst.msk [vmem:[#allocation2 + $0x28] sm:$0xff] (!%p238_p2), %vm319_vm1, %v2500_v33  ;;  %684 = vst.msk [vmem:[#allocation2 + $0x38] sm:$0xff] (!%p238_p2), %vm319_vm1, %v2500_v33 }
   0xa   : > { %685 = vst.msk [vmem:[#allocation2 + $0x40] sm:$0xff] (!%p238_p2), %vm319_vm1, %v2500_v33  ;;  %686 = vst.msk [vmem:[#allocation2 + $0x48] sm:$0xff] (!%p238_p2), %vm319_vm1, %v2500_v33 }
   0xb   : > { %687 = vst.msk [vmem:[#allocation2 + $0x50] sm:$0xff] (!%p238_p2), %vm319_vm1, %v2500_v33  ;;  %688 = vst.msk [vmem:[#allocation2 + $0x58] sm:$0xff] (!%p238_p2), %vm319_vm1, %v2500_v33 }
   0xc   : > { %689 = vst.msk [vmem:[#allocation2 + $0x60] sm:$0xff] (!%p238_p2), %vm319_vm1, %v2500_v33  ;;  %690 = vst.msk [vmem:[#allocation2 + $0x68] sm:$0xff] (!%p238_p2), %vm319_vm1, %v2500_v33 }
   0xd   : > { %s3711_s25 = smov (!%p269_p3, %s2208_s25), 1  ;;  %691 = vst.msk [vmem:[#allocation2 + $0x70] sm:$0xff] %vm319_vm1, %v2500_v33  ;;  %692 = vst.msk [vmem:[#allocation2 + $0x78] sm:$0xff] %vm319_vm1, %v2500_v33 }
   0xe   : > { %s2305_s28 = sshll.u32 %s3711_s25, 8  ;;  %693 = vst.msk [vmem:[#allocation2 + $0x80] sm:$0xff] %vm319_vm1, %v2500_v33  ;;  %694 = vst.msk [vmem:[#allocation2 + $0x88] sm:$0xff] %vm319_vm1, %v2500_v33  ;;  %v782_v37 = vld [vmem:[#allocation2 + $0x7] sm:$0xff]  ;;  %v783_v44 = vld [vmem:[#allocation2 + $0xf] sm:$0xff] }
   0xf   : > { %s2562_s8 = scalar_lea.vmem %s3702_s0, %s2305_s28  ;;  %695 = vst.msk [vmem:[#allocation2 + $0x90] sm:$0xff] %vm319_vm1, %v2500_v33  ;;  %696 = vst.msk [vmem:[#allocation2 + $0x98] sm:$0xff] %vm319_vm1, %v2500_v33  ;;  %v885_v41 = vld [vmem:[#allocation2 + $0x8] sm:$0xff]  ;;  %v886_v45 = vld [vmem:[#allocation2 + $0x10] sm:$0xff]  ;;  %v821_v49 = vmul.f32 %v2786_v40, %v782_v37  ;;  %v822_v55 = vmul.f32 %v2786_v40, %v783_v44  ;;  %s3602_s17 = scalar_lea.vmem %s3709_s7, %s2305_s28 }
  0x10   : > { %v279_v1 = vld [vmem:[%s2562_s8] sm:$0xff]  ;;  %v280_v2 = vld [vmem:[%s2562_s8 + $0x8] sm:$0xff]  ;;  %v281_v3 = vld [vmem:[%s2562_s8 + $0x10] sm:$0xff]  ;;  %697 = vst.msk [vmem:[#allocation2 + $0xa0] sm:$0xff] %vm319_vm1, %v2500_v33  ;;  %v925_v50 = vmul.f32 %v2791_v42, %v885_v41  ;;  %v926_v56 = vmul.f32 %v2791_v42, %v886_v45 }
  0x11   : > { %2375 = vmatprep.mubr.msk.f32.mxu0 %vm319_vm1, %v279_v1  ;;  %v282_v4 = vld [vmem:[%s2562_s8 + $0x18] sm:$0xff]  ;;  %v283_v5 = vld [vmem:[%s2562_s8 + $0x20] sm:$0xff]  ;;  %v284_v6 = vld [vmem:[%s2562_s8 + $0x28] sm:$0xff]  ;;  %698 = vst.msk [vmem:[#allocation2 + $0xa8] sm:$0xff] %vm319_vm1, %v2500_v33 }
  0x12   : > { %2376 = vmatmul.mubr.msk.f32.vlgmr.msra.gmra.mrb[0].mxu0 %vm319_vm1, %v280_v2  ;;  %v285_v7 = vld [vmem:[%s2562_s8 + $0x30] sm:$0xff]  ;;  %v286_v8 = vld [vmem:[%s2562_s8 + $0x38] sm:$0xff]  ;;  %v287_v9 = vld [vmem:[%s2562_s8 + $0x40] sm:$0xff]  ;;  %699 = vst.msk [vmem:[#allocation2 + $0xb0] sm:$0xff] %vm319_vm1, %v2500_v33  ;;  %v957_v62 = vadd.f32 %v925_v50, %v821_v49  ;;  %v958_v2 = vadd.f32 %v926_v56, %v822_v55 }
  0x13   : > { %2378 = vmatprep.mubr.msk.f32.mxu0 %vm319_vm1, %v281_v3  ;;  %v288_v10 = vld [vmem:[%s2562_s8 + $0x48] sm:$0xff]  ;;  %v289_v11 = vld [vmem:[%s2562_s8 + $0x50] sm:$0xff]  ;;  %v290_v12 = vld [vmem:[%s2562_s8 + $0x58] sm:$0xff]  ;;  %700 = vst.msk [vmem:[#allocation2 + $0xb8] sm:$0xff] %vm319_vm1, %v2500_v33 }
  0x14   : > { %v291_v13 = vld [vmem:[%s2562_s8 + $0x60] sm:$0xff]  ;;  %v292_v14 = vld [vmem:[%s2562_s8 + $0x68] sm:$0xff]  ;;  %v293_v15 = vld [vmem:[%s2562_s8 + $0x70] sm:$0xff]  ;;  %701 = vst.msk [vmem:[#allocation2 + $0xc0] sm:$0xff] %vm319_vm1, %v2500_v33 }
  0x15   : > { %v294_v16 = vld [vmem:[%s2562_s8 + $0x78] sm:$0xff]  ;;  %v295_v17 = vld [vmem:[%s2562_s8 + $0x80] sm:$0xff]  ;;  %v296_v18 = vld [vmem:[%s2562_s8 + $0x88] sm:$0xff]  ;;  %702 = vst.msk [vmem:[#allocation2 + $0xc8] sm:$0xff] %vm319_vm1, %v2500_v33 }
  0x16   : > { %2379 = vmatmul.mubr.msk.f32.gmra.mrb[2].mxu0 %vm319_vm1, %v282_v4  ;;  %v297_v19 = vld [vmem:[%s2562_s8 + $0x90] sm:$0xff]  ;;  %v298_v20 = vld [vmem:[%s2562_s8 + $0x98] sm:$0xff]  ;;  %v299_v21 = vld [vmem:[%s2562_s8 + $0xa0] sm:$0xff]  ;;  %703 = vst.msk [vmem:[#allocation2 + $0xd0] sm:$0xff] %vm319_vm1, %v2500_v33 }
  0x17   : > { %2381 = vmatprep.mubr.msk.f32.mxu0 %vm319_vm1, %v283_v5  ;;  %v300_v22 = vld [vmem:[%s2562_s8 + $0xa8] sm:$0xff]  ;;  %v301_v23 = vld [vmem:[%s2562_s8 + $0xb0] sm:$0xff]  ;;  %v302_v24 = vld [vmem:[%s2562_s8 + $0xb8] sm:$0xff]  ;;  %704 = vst.msk [vmem:[#allocation2 + $0xd8] sm:$0xff] %vm319_vm1, %v2500_v33 }
  0x18   : > { %v303_v25 = vld [vmem:[%s2562_s8 + $0xc0] sm:$0xff]  ;;  %v304_v26 = vld [vmem:[%s2562_s8 + $0xc8] sm:$0xff]  ;;  %v305_v27 = vld [vmem:[%s2562_s8 + $0xd0] sm:$0xff]  ;;  %705 = vst.msk [vmem:[#allocation2 + $0xe0] sm:$0xff] %vm319_vm1, %v2500_v33 }
  0x19   : > { %v306_v28 = vld [vmem:[%s2562_s8 + $0xd8] sm:$0xff]  ;;  %v307_v29 = vld [vmem:[%s2562_s8 + $0xe0] sm:$0xff]  ;;  %v308_v30 = vld [vmem:[%s2562_s8 + $0xe8] sm:$0xff]  ;;  %706 = vst.msk [vmem:[#allocation2 + $0xe8] sm:$0xff] %vm319_vm1, %v2500_v33 }
  0x1a   : > { %2382 = vmatmul.mubr.msk.f32.gmra.mrb[4].mxu0 %vm319_vm1, %v284_v6  ;;  %v309_v31 = vld [vmem:[%s2562_s8 + $0xf0] sm:$0xff]  ;;  %v310_v32 = vld [vmem:[%s2562_s8 + $0xf8] sm:$0xff]  ;;  %707 = vst.msk [vmem:[#allocation2 + $0xf0] sm:$0xff] %vm319_vm1, %v2500_v33  ;;  %708 = vst.msk [vmem:[#allocation2 + $0xf8] sm:$0xff] %vm319_vm1, %v2500_v33 }
  0x1b   : > { %2384 = vmatprep.mubr.msk.f32.mxu0 %vm319_vm1, %v285_v7  ;;  %709 = vst.msk [vmem:[#allocation2 + $0x100] sm:$0xff] %vm319_vm1, %v2500_v33  ;;  %710 = vst.msk [vmem:[#allocation2 + $0x108] sm:$0xff] %vm319_vm1, %v2500_v33  ;;  %v989_v53 = vld [vmem:[#allocation2 + $0x9] sm:$0xff]  ;;  %v990_v58 = vld [vmem:[#allocation2 + $0x11] sm:$0xff] }
  0x1c   : > { %711 = vst.msk [vmem:[#allocation2 + $0x110] sm:$0xff] %vm319_vm1, %v2500_v33  ;;  %712 = vst.msk [vmem:[#allocation2 + $0x118] sm:$0xff] %vm319_vm1, %v2500_v33  ;;  %v1029_v63 = vmul.f32 %v2801_v54, %v989_v53  ;;  %v1030_v3 = vmul.f32 %v2801_v54, %v990_v58  ;;  %v2816_v6 = vld [vmem:[%s3705_s3 + $0x3] ss:$0 sm:$0xff]  ;;  %v2821_v7 = vld [vmem:[%s3705_s3 + $0x4] ss:$0 sm:$0xff] }
  0x1d   : > { %713 = vst.msk [vmem:[#allocation2 + $0x120] sm:$0xff] %vm319_vm1, %v2500_v33  ;;  %714 = vst.msk [vmem:[#allocation2 + $0x128] sm:$0xff] %vm319_vm1, %v2500_v33 }
  0x1e   : > { %2385 = vmatmul.mubr.msk.f32.gmra.mrb[6].mxu0 %vm319_vm1, %v286_v8  ;;  %715 = vst.msk [vmem:[#allocation2 + $0x130] sm:$0xff] %vm319_vm1, %v2500_v33  ;;  %716 = vst.msk [vmem:[#allocation2 + $0x138] sm:$0xff] %vm319_vm1, %v2500_v33 }
  0x1f   : > { %2387 = vmatprep.mubr.msk.f32.mxu0 %vm319_vm1, %v287_v9  ;;  %717 = vst.msk [vmem:[#allocation2 + $0x140] sm:$0xff] %vm319_vm1, %v2500_v33  ;;  %718 = vst.msk [vmem:[#allocation2 + $0x148] sm:$0xff] %vm319_vm1, %v2500_v33 }
  0x20   : > { %719 = vst.msk [vmem:[#allocation2 + $0x150] sm:$0xff] %vm319_vm1, %v2500_v33  ;;  %720 = vst.msk [vmem:[#allocation2 + $0x158] sm:$0xff] %vm319_vm1, %v2500_v33 }
  0x21   : > { %721 = vst.msk [vmem:[#allocation2 + $0x160] sm:$0xff] %vm319_vm1, %v2500_v33  ;;  %722 = vst.msk [vmem:[#allocation2 + $0x168] sm:$0xff] %vm319_vm1, %v2500_v33 }
  0x22   : > { %2388 = vmatmul.mubr.msk.f32.gmra.mrb[8].mxu0 %vm319_vm1, %v288_v10  ;;  %723 = vst.msk [vmem:[#allocation2 + $0x170] sm:$0xff] %vm319_vm1, %v2500_v33  ;;  %724 = vst.msk [vmem:[#allocation2 + $0x178] sm:$0xff] %vm319_vm1, %v2500_v33  ;;  %v1061_v10 = vadd.f32 %v1029_v63, %v957_v62 }
  0x23   : > { %2390 = vmatprep.mubr.msk.f32.mxu0 %vm319_vm1, %v289_v11  ;;  %725 = vst.msk [vmem:[#allocation2 + $0x180] sm:$0xff] %vm319_vm1, %v2500_v33  ;;  %726 = vst.msk [vmem:[#allocation2 + $0x188] sm:$0xff] %vm319_vm1, %v2500_v33  ;;  %v2826_v11 = vld [vmem:[%s3705_s3 + $0x5] ss:$0 sm:$0xff] }
  0x24   : > { %727 = vst.msk [vmem:[#allocation2 + $0x190] sm:$0xff] %vm319_vm1, %v2500_v33  ;;  %728 = vst.msk [vmem:[#allocation2 + $0x198] sm:$0xff] %vm319_vm1, %v2500_v33 }
  0x25   : > { %729 = vst.msk [vmem:[#allocation2 + $0x1a0] sm:$0xff] %vm319_vm1, %v2500_v33  ;;  %730 = vst.msk [vmem:[#allocation2 + $0x1a8] sm:$0xff] %vm319_vm1, %v2500_v33 }
  0x26   : > { %2391 = vmatmul.mubr.msk.f32.gmra.mrb[10].mxu0 %vm319_vm1, %v290_v12  ;;  %731 = vst.msk [vmem:[#allocation2 + $0x1b0] sm:$0xff] %vm319_vm1, %v2500_v33  ;;  %732 = vst.msk [vmem:[#allocation2 + $0x1b8] sm:$0xff] %vm319_vm1, %v2500_v33 }
  0x27   : > { %2393 = vmatprep.mubr.msk.f32.mxu0 %vm319_vm1, %v291_v13  ;;  %733 = vst.msk [vmem:[#allocation2 + $0x1c0] sm:$0xff] %vm319_vm1, %v2500_v33  ;;  %734 = vst.msk [vmem:[#allocation2 + $0x1c8] sm:$0xff] %vm319_vm1, %v2500_v33 }
  0x28   : > { %735 = vst.msk [vmem:[#allocation2 + $0x1d0] sm:$0xff] %vm319_vm1, %v2500_v33  ;;  %736 = vst.msk [vmem:[#allocation2 + $0x1d8] sm:$0xff] %vm319_vm1, %v2500_v33 }
  0x29   : > { %737 = vst.msk [vmem:[#allocation2 + $0x1e0] sm:$0xff] %vm319_vm1, %v2500_v33  ;;  %738 = vst.msk [vmem:[#allocation2 + $0x1e8] sm:$0xff] %vm319_vm1, %v2500_v33 }
  0x2a   : > { %2394 = vmatmul.mubr.msk.f32.gmra.mrb[12].mxu0 %vm319_vm1, %v292_v14  ;;  %739 = vst.msk [vmem:[#allocation2 + $0x1f0] sm:$0xff] %vm319_vm1, %v2500_v33  ;;  %740 = vst.msk [vmem:[#allocation2 + $0x1f8] sm:$0xff] %vm319_vm1, %v2500_v33 }
  0x2b   : > { %2396 = vmatprep.mubr.msk.f32.mxu0 %vm319_vm1, %v293_v15  ;;  %741 = vst.msk [vmem:[#allocation2 + $0x200] sm:$0xff] %vm319_vm1, %v2500_v33  ;;  %742 = vst.msk [vmem:[#allocation2 + $0x208] sm:$0xff] %vm319_vm1, %v2500_v33 }
  0x2c   : > { %743 = vst.msk [vmem:[#allocation2 + $0x210] sm:$0xff] %vm319_vm1, %v2500_v33  ;;  %744 = vst.msk [vmem:[#allocation2 + $0x218] sm:$0xff] %vm319_vm1, %v2500_v33 }
  0x2d   : > { %745 = vst.msk [vmem:[#allocation2 + $0x220] sm:$0xff] %vm319_vm1, %v2500_v33  ;;  %746 = vst.msk [vmem:[#allocation2 + $0x228] sm:$0xff] %vm319_vm1, %v2500_v33 }
  0x2e   : > { %2397 = vmatmul.mubr.msk.f32.gmra.mrb[14].mxu0 %vm319_vm1, %v294_v16  ;;  %747 = vst.msk [vmem:[#allocation2 + $0x230] sm:$0xff] %vm319_vm1, %v2500_v33  ;;  %748 = vst.msk [vmem:[#allocation2 + $0x238] sm:$0xff] %vm319_vm1, %v2500_v33 }
  0x2f   : > { %2399 = vmatprep.mubr.msk.f32.mxu0 %vm319_vm1, %v295_v17 }
  0x32   : > { %2400 = vmatmul.mubr.msk.f32.gmra.mrb[16].mxu0 %vm319_vm1, %v296_v18  ;;  %v1062_v18 = vadd.f32 %v1030_v3, %v958_v2 }
  0x33   : > { %2402 = vmatprep.mubr.msk.f32.mxu0 %vm319_vm1, %v297_v19 }
  0x36   : > { %2403 = vmatmul.mubr.msk.f32.gmra.mrb[18].mxu0 %vm319_vm1, %v298_v20 }
  0x37   : > { %2405 = vmatprep.mubr.msk.f32.mxu0 %vm319_vm1, %v299_v21 }
  0x3a   : > { %2406 = vmatmul.mubr.msk.f32.gmra.mrb[20].mxu0 %vm319_vm1, %v300_v22 }
  0x3b   : > { %2408 = vmatprep.mubr.msk.f32.mxu0 %vm319_vm1, %v301_v23 }
  0x3e   : > { %2409 = vmatmul.mubr.msk.f32.gmra.mrb[22].mxu0 %vm319_vm1, %v302_v24 }
  0x3f   : > { %2411 = vmatprep.mubr.msk.f32.mxu0 %vm319_vm1, %v303_v25 }
  0x42   : > { %2412 = vmatmul.mubr.msk.f32.gmra.mrb[24].mxu0 %vm319_vm1, %v304_v26  ;;  %v2840_v26 = vld [vmem:[%s3705_s3 + $0x7] ss:$0 sm:$0xff] }
  0x43   : > { %2414 = vmatprep.mubr.msk.f32.mxu0 %vm319_vm1, %v305_v27 }
  0x46   : > { %2415 = vmatmul.mubr.msk.f32.gmra.mrb[26].mxu0 %vm319_vm1, %v306_v28 }
  0x47   : > { %2417 = vmatprep.mubr.msk.f32.mxu0 %vm319_vm1, %v307_v29 }
  0x4a   : > { %2418 = vmatmul.mubr.msk.f32.gmra.mrb[28].mxu0 %vm319_vm1, %v308_v30 }
  0x4b   : > { %2420 = vmatprep.mubr.msk.f32.mxu0 %vm319_vm1, %v309_v31 }
  0x4e   : > { %2421 = vmatmul.mubr.msk.f32.gmra.mrb[30].mxu0 %vm319_vm1, %v310_v32  ;;  %v2848_v32 = vld [vmem:[%s3705_s3 + $0x6] ss:$0 sm:$0xff] }
  0xe5   : > { %v2377_v36 = vpop.f32.mrb[0].mxu0 }
  0xe6   : > { %v492_v38 = vadd.f32 %v2377_v36, %v2780_v35  ;;  %v486_v39 = vpop.f32.mrb[1].mxu0 }
  0xe7   : > { %v487_v43 = vadd.f32 %v2780_v35, %v486_v39 }
  0xe8   : > { %v646_v46 = vmax.f32 %v492_v38, 0.0 }
  0xe9   : > { %v645_v47 = vmax.f32 %v487_v43, 0.0  ;;  %v2380_v48 = vpop.f32.mrb[2].mxu0 }
  0xea   : > { %751 = vst.msk [vmem:[#allocation2 + $0x30] sm:$0xff] %vm319_vm1, %v646_v46  ;;  %v502_v51 = vadd.f32 %v2380_v48, %v2780_v35  ;;  %v496_v52 = vpop.f32.mrb[3].mxu0 }
  0xeb   : > { %750 = vst.msk [vmem:[#allocation2 + $0x28] sm:$0xff] %vm319_vm1, %v645_v47  ;;  %v497_v57 = vadd.f32 %v2780_v35, %v496_v52  ;;  %v2865_v47 = vld [vmem:[%s3705_s3 + $0x8] ss:$0 sm:$0xff] }
  0xec   : > { %v648_v59 = vmax.f32 %v502_v51, 0.0 }
  0xed   : > { %v647_v60 = vmax.f32 %v497_v57, 0.0  ;;  %v2383_v61 = vpop.f32.mrb[4].mxu0 }
  0xee   : > { %753 = vst.msk [vmem:[#allocation2 + $0x50] sm:$0xff] %vm319_vm1, %v648_v59  ;;  %v512_v0 = vadd.f32 %v2383_v61, %v2780_v35  ;;  %v506_v1 = vpop.f32.mrb[5].mxu0 }
  0xef   : > { %752 = vst.msk [vmem:[#allocation2 + $0x48] sm:$0xff] %vm319_vm1, %v647_v60  ;;  %v507_v4 = vadd.f32 %v2780_v35, %v506_v1 }
  0xf0   : > { %v650_v5 = vmax.f32 %v512_v0, 0.0 }
  0xf1   : > { %v649_v8 = vmax.f32 %v507_v4, 0.0  ;;  %v2386_v9 = vpop.f32.mrb[6].mxu0  ;;  %v1198_v12 = vld [vmem:[#allocation2 + $0x30] sm:$0xff] }
  0xf2   : > { %v2828_v13 = vld [vmem:[#allocation2 + $0x31] sm:$0xff]  ;;  %755 = vst.msk [vmem:[#allocation2 + $0x70] sm:$0xff] %vm319_vm1, %v650_v5  ;;  %v522_v14 = vadd.f32 %v2386_v9, %v2780_v35  ;;  %v516_v15 = vpop.f32.mrb[7].mxu0  ;;  %v1093_v16 = vld [vmem:[#allocation2 + $0x27] sm:$0xff]  ;;  %v1238_v23 = vmul.f32 %v2821_v7, %v1198_v12  ;;  %v928_v44 = vmul.f32 %v2791_v42, %v1198_v12 }
  0xf3   : > { %v1197_v17 = vld [vmem:[#allocation2 + $0x28] sm:$0xff]  ;;  %754 = vst.msk [vmem:[#allocation2 + $0x68] sm:$0xff] %vm319_vm1, %v649_v8  ;;  %v517_v19 = vadd.f32 %v2780_v35, %v516_v15  ;;  %v1133_v20 = vmul.f32 %v2816_v6, %v1093_v16  ;;  %v1342_v28 = vmul.f32 %v2826_v11, %v2828_v13  ;;  %v823_v34 = vmul.f32 %v2786_v40, %v1093_v16 }
  0xf4   : > { %v1301_v21 = vld [vmem:[#allocation2 + $0x29] sm:$0xff]  ;;  %v652_v24 = vmax.f32 %v522_v14, 0.0  ;;  %v1237_v25 = vmul.f32 %v2821_v7, %v1197_v17  ;;  %v927_v36 = vmul.f32 %v2791_v42, %v1197_v17 }
  0xf5   : > { %v1094_v22 = vld [vmem:[#allocation2 + $0x2f] sm:$0xff]  ;;  %v651_v29 = vmax.f32 %v517_v19, 0.0  ;;  %v2389_v30 = vpop.f32.mrb[8].mxu0  ;;  %v1165_v31 = vadd.f32 %v1133_v20, %v1061_v10  ;;  %v1341_v39 = vmul.f32 %v2826_v11, %v1301_v21  ;;  %v1031_v50 = vmul.f32 %v2801_v54, %v1301_v21 }
  0xf6   : > { %v1134_v27 = vmul.f32 %v2816_v6, %v1094_v22  ;;  %v2850_v33 = vld [vmem:[#allocation2 + $0x50] sm:$0xff]  ;;  %757 = vst.msk [vmem:[#allocation2 + $0x90] sm:$0xff] %vm319_vm1, %v652_v24  ;;  %v532_v37 = vadd.f32 %v2389_v30, %v2780_v35  ;;  %v526_v38 = vpop.f32.mrb[9].mxu0  ;;  %v2857_v41 = vld [vmem:[#allocation2 + $0x47] sm:$0xff]  ;;  %v824_v51 = vmul.f32 %v2786_v40, %v1094_v22  ;;  %v959_v62 = vadd.f32 %v927_v36, %v823_v34 }
  0xf7   : > { %756 = vst.msk [vmem:[#allocation2 + $0x88] sm:$0xff] %vm319_vm1, %v651_v29  ;;  %v527_v45 = vadd.f32 %v2780_v35, %v526_v38  ;;  %v1269_v46 = vadd.f32 %v1237_v25, %v1165_v31  ;;  %v2867_v48 = vld [vmem:[#allocation2 + $0x4f] sm:$0xff]  ;;  %v1446_v53 = vmul.f32 %v2848_v32, %v2857_v41  ;;  %v1551_v57 = vmul.f32 %v2840_v26, %v2850_v33  ;;  %v2904_v25 = vld [vmem:[%s3706_s4] ss:$0 sm:$0xff] }
  0xf8   : > { %v1166_v43 = vadd.f32 %v1134_v27, %v1062_v18  ;;  %v2869_v49 = vld [vmem:[#allocation2 + $0x51] sm:$0xff]  ;;  %v654_v52 = vmax.f32 %v532_v37, 0.0  ;;  %v2875_v55 = vld [vmem:[#allocation2 + $0x48] sm:$0xff]  ;;  %v1135_v63 = vmul.f32 %v2816_v6, %v2857_v41  ;;  %v1447_v3 = vmul.f32 %v2848_v32, %v2867_v48 }
  0xf9   : > { %v653_v58 = vmax.f32 %v527_v45, 0.0  ;;  %v2392_v59 = vpop.f32.mrb[10].mxu0  ;;  %v1373_v60 = vadd.f32 %v1341_v39, %v1269_v46  ;;  %v2879_v61 = vld [vmem:[#allocation2 + $0x49] sm:$0xff]  ;;  %v1655_v4 = vmul.f32 %v2865_v47, %v2869_v49  ;;  %v1550_v9 = vmul.f32 %v2840_v26, %v2875_v55 }
  0xfa   : > { %v1270_v56 = vadd.f32 %v1238_v23, %v1166_v43  ;;  %759 = vst.msk [vmem:[#allocation2 + $0xb0] sm:$0xff] %vm319_vm1, %v654_v52  ;;  %v542_v0 = vadd.f32 %v2392_v59, %v2780_v35  ;;  %v536_v1 = vpop.f32.mrb[11].mxu0  ;;  %v1063_v10 = vadd.f32 %v1031_v50, %v959_v62  ;;  %v1654_v14 = vmul.f32 %v2865_v47, %v2879_v61  ;;  %v2897_v21 = vld [vmem:[#allocation2 + $0x67] sm:$0xff] }
  0xfb   : > { %758 = vst.msk [vmem:[#allocation2 + $0xa8] sm:$0xff] %vm319_vm1, %v653_v58  ;;  %v537_v5 = vadd.f32 %v2780_v35, %v536_v1  ;;  %v1478_v8 = vadd.f32 %v1446_v53, %v1373_v60  ;;  %v1239_v16 = vmul.f32 %v2821_v7, %v2875_v55  ;;  %v960_v22 = vadd.f32 %v928_v44, %v824_v51  ;;  %v2918_v44 = vld [vmem:[#allocation2 + $0x69] sm:$0xff] }
  0xfc   : > { %v1374_v2 = vadd.f32 %v1342_v28, %v1270_v56  ;;  %v656_v12 = vmax.f32 %v542_v0, 0.0  ;;  %v1167_v20 = vadd.f32 %v1135_v63, %v1063_v10  ;;  %v2906_v28 = vld [vmem:[#allocation2 + $0x68] sm:$0xff]  ;;  %v1032_v29 = vmul.f32 %v2801_v54, %v2828_v13 }
  0xfd   : > { %v655_v17 = vmax.f32 %v537_v5, 0.0  ;;  %v2395_v18 = vpop.f32.mrb[12].mxu0  ;;  %v1582_v19 = vadd.f32 %v1550_v9, %v1478_v8  ;;  %v1136_v30 = vmul.f32 %v2816_v6, %v2867_v48  ;;  %v1343_v37 = vmul.f32 %v2826_v11, %v2879_v61  ;;  %v2928_v60 = vld [vmem:[#allocation2 + $0x6f] sm:$0xff] }
  0xfe   : > { %v1479_v15 = vadd.f32 %v1447_v3, %v1374_v2  ;;  %761 = vst.msk [vmem:[#allocation2 + $0xd0] sm:$0xff] %vm319_vm1, %v656_v12  ;;  %v552_v23 = vadd.f32 %v2395_v18, %v2780_v35  ;;  %v546_v24 = vpop.f32.mrb[13].mxu0  ;;  %v1271_v36 = vadd.f32 %v1239_v16, %v1167_v20  ;;  %v1448_v43 = vmul.f32 %v2848_v32, %v2897_v21  ;;  %v2940_v5 = vld [vmem:[#allocation2 + $0x70] sm:$0xff] }
  0xff   : > { %760 = vst.msk [vmem:[#allocation2 + $0xc8] sm:$0xff] %vm319_vm1, %v655_v17  ;;  %v547_v31 = vadd.f32 %v2780_v35, %v546_v24  ;;  %v1686_v34 = vadd.f32 %v1654_v14, %v1582_v19  ;;  %v1064_v13 = vadd.f32 %v1032_v29, %v960_v22  ;;  %v1552_v52 = vmul.f32 %v2840_v26, %v2906_v28 }
 0x100   : > { %v1583_v27 = vadd.f32 %v1551_v57, %v1479_v15  ;;  %v658_v38 = vmax.f32 %v552_v23, 0.0  ;;  %v1375_v51 = vadd.f32 %v1343_v37, %v1271_v36  ;;  %v1240_v59 = vmul.f32 %v2821_v7, %v2850_v33  ;;  %v2946_v15 = vld [vmem:[#allocation2 + $0x71] sm:$0xff] }
 0x101   : > { %v657_v45 = vmax.f32 %v547_v31, 0.0  ;;  %v2398_v46 = vpop.f32.mrb[14].mxu0  ;;  %v1725_v50 = vadd.f32 %v2904_v25, %v1686_v34  ;;  %v1168_v58 = vadd.f32 %v1136_v30, %v1064_v13  ;;  %v1656_v0 = vmul.f32 %v2865_v47, %v2918_v44 }
 0x102   : > { %v1687_v39 = vadd.f32 %v1655_v4, %v1583_v27  ;;  %763 = vst.msk [vmem:[#allocation2 + $0xf0] sm:$0xff] %vm319_vm1, %v658_v38  ;;  %v562_v53 = vadd.f32 %v2398_v46, %v2780_v35  ;;  %v556_v56 = vpop.f32.mrb[15].mxu0  ;;  %v1480_v63 = vadd.f32 %v1448_v43, %v1375_v51  ;;  %v825_v1 = vmul.f32 %v2786_v40, %v2857_v41  ;;  %v2969_v46 = vld [vmem:[#allocation2 + $0x87] sm:$0xff] }
 0x103   : > { %762 = vst.msk [vmem:[#allocation2 + $0xe8] sm:$0xff] %vm319_vm1, %v657_v45  ;;  %v557_v62 = vadd.f32 %v2780_v35, %v556_v56  ;;  %2425 = vmatprep.mubr.msk.f32.mxu1 %vm319_vm1, %v1725_v50  ;;  %v1272_v3 = vadd.f32 %v1240_v59, %v1168_v58  ;;  %v1344_v4 = vmul.f32 %v2826_v11, %v2869_v49  ;;  %v2971_v50 = vld [vmem:[#allocation2 + $0x88] sm:$0xff] }
 0x104   : > { %v1726_v57 = vadd.f32 %v2904_v25, %v1687_v39  ;;  %v660_v2 = vmax.f32 %v562_v53, 0.0  ;;  %v929_v8 = vmul.f32 %v2791_v42, %v2875_v55  ;;  %v1584_v12 = vadd.f32 %v1552_v52, %v1480_v63 }
 0x105   : > { %v659_v9 = vmax.f32 %v557_v62, 0.0  ;;  %v2401_v10 = vpop.f32.mrb[16].mxu0  ;;  %v1449_v14 = vmul.f32 %v2848_v32, %v2928_v60  ;;  %v1033_v41 = vmul.f32 %v2801_v54, %v2879_v61  ;;  %v1376_v18 = vadd.f32 %v1344_v4, %v1272_v3 }
 0x106   : > { %2426 = vmatmul.mubr.msk.f32.vlgmr.msra.gmra.mrb[0].mxu1 %vm319_vm1, %v1726_v57  ;;  %765 = vst.msk [vmem:[#allocation2 + $0x110] sm:$0xff] %vm319_vm1, %v660_v2  ;;  %v572_v16 = vadd.f32 %v2401_v10, %v2780_v35  ;;  %v566_v17 = vpop.f32.mrb[17].mxu0  ;;  %v961_v19 = vadd.f32 %v929_v8, %v825_v1  ;;  %v1137_v55 = vmul.f32 %v2816_v6, %v2897_v21 }
 0x107   : > { %764 = vst.msk [vmem:[#allocation2 + $0x108] sm:$0xff] %vm319_vm1, %v659_v9  ;;  %v567_v20 = vadd.f32 %v2780_v35, %v566_v17  ;;  %v1688_v22 = vadd.f32 %v1656_v0, %v1584_v12  ;;  %v1553_v23 = vmul.f32 %v2840_v26, %v2940_v5  ;;  %v1481_v61 = vadd.f32 %v1449_v14, %v1376_v18  ;;  %v1618_v9 = vld [vmem:[#allocation2 + $0x89] sm:$0xff] }
 0x108   : > { %v662_v24 = vmax.f32 %v572_v16, 0.0  ;;  %v1657_v27 = vmul.f32 %v2865_v47, %v2946_v15  ;;  %v1065_v29 = vadd.f32 %v1033_v41, %v961_v19  ;;  %v826_v36 = vmul.f32 %v2786_v40, %v2867_v48  ;;  %v2992_v12 = vld [vmem:[#allocation2 + $0x8f] sm:$0xff] }
 0x109   : > { %v661_v30 = vmax.f32 %v567_v20, 0.0  ;;  %v1727_v31 = vadd.f32 %v2904_v25, %v1688_v22  ;;  %v2404_v34 = vpop.f32.mrb[18].mxu0  ;;  %v930_v37 = vmul.f32 %v2791_v42, %v2850_v33  ;;  %v1585_v38 = vadd.f32 %v1553_v23, %v1481_v61  ;;  %v3002_v19 = vld [vmem:[#allocation2 + $0x90] sm:$0xff] }
 0x10a   : > { %767 = vst.msk [vmem:[#allocation2 + $0x130] sm:$0xff] %vm319_vm1, %v662_v24  ;;  %v582_v39 = vadd.f32 %v2404_v34, %v2780_v35  ;;  %v576_v43 = vpop.f32.mrb[19].mxu0  ;;  %v1169_v13 = vadd.f32 %v1137_v55, %v1065_v29  ;;  %v1241_v45 = vmul.f32 %v2821_v7, %v2906_v28  ;;  %v1034_v51 = vmul.f32 %v2801_v54, %v2869_v49  ;;  %v3006_v23 = vld [vmem:[#allocation2 + $0x91] sm:$0xff] }
 0x10b   : > { %766 = vst.msk [vmem:[#allocation2 + $0x128] sm:$0xff] %vm319_vm1, %v661_v30  ;;  %2428 = vmatprep.mubr.msk.f32.mxu1 %vm319_vm1, %v1727_v31  ;;  %v577_v33 = vadd.f32 %v2780_v35, %v576_v43  ;;  %v962_v48 = vadd.f32 %v930_v37, %v826_v36  ;;  %v1138_v52 = vmul.f32 %v2816_v6, %v2928_v60  ;;  %v3014_v31 = vld [vmem:[#allocation2 + $0xa7] sm:$0xff] }
 0x10c   : > { %v1689_v53 = vadd.f32 %v1657_v27, %v1585_v38  ;;  %v664_v56 = vmax.f32 %v582_v39, 0.0  ;;  %v1273_v57 = vadd.f32 %v1241_v45, %v1169_v13  ;;  %v1345_v58 = vmul.f32 %v2826_v11, %v2918_v44 }
 0x10d   : > { %v663_v59 = vmax.f32 %v577_v33, 0.0  ;;  %v1450_v62 = vmul.f32 %v2848_v32, %v2969_v46  ;;  %v1554_v63 = vmul.f32 %v2840_v26, %v2971_v50  ;;  %v1066_v0 = vadd.f32 %v1034_v51, %v962_v48  ;;  %v2407_v1 = vpop.f32.mrb[20].mxu0 }
 0x10e   : > { %v1728_v49 = vadd.f32 %v2904_v25, %v1689_v53  ;;  %769 = vst.msk [vmem:[#allocation2 + $0x150] sm:$0xff] %vm319_vm1, %v664_v56  ;;  %v1377_v2 = vadd.f32 %v1345_v58, %v1273_v57  ;;  %v1242_v3 = vmul.f32 %v2821_v7, %v2940_v5  ;;  %v592_v4 = vadd.f32 %v2407_v1, %v2780_v35  ;;  %v586_v8 = vpop.f32.mrb[21].mxu0  ;;  %v3043_v1 = vld [vmem:[#allocation2 + $0xa8] sm:$0xff] }
 0x10f   : > { %768 = vst.msk [vmem:[#allocation2 + $0x148] sm:$0xff] %vm319_vm1, %v663_v59  ;;  %v1170_v10 = vadd.f32 %v1138_v52, %v1066_v0  ;;  %v587_v14 = vadd.f32 %v2780_v35, %v586_v8  ;;  %v827_v41 = vmul.f32 %v2786_v40, %v2897_v21  ;;  %v931_v16 = vmul.f32 %v2791_v42, %v2906_v28 }
 0x110   : > { %2429 = vmatmul.mubr.msk.f32.gmra.mrb[2].mxu1 %vm319_vm1, %v1728_v49  ;;  %v1482_v17 = vadd.f32 %v1450_v62, %v1377_v2  ;;  %v1346_v18 = vmul.f32 %v2826_v11, %v2946_v15  ;;  %v666_v55 = vmax.f32 %v592_v4, 0.0  ;;  %v1035_v20 = vmul.f32 %v2801_v54, %v2918_v44  ;;  %v3045_v49 = vld [vmem:[#allocation2 + $0xa9] sm:$0xff] }
 0x111   : > { %v1274_v22 = vadd.f32 %v1242_v3, %v1170_v10  ;;  %v665_v24 = vmax.f32 %v587_v14, 0.0  ;;  %v963_v21 = vadd.f32 %v931_v16, %v827_v41  ;;  %v1139_v28 = vmul.f32 %v2816_v6, %v2969_v46  ;;  %v2410_v61 = vpop.f32.mrb[22].mxu0  ;;  %v3052_v14 = vld [vmem:[#allocation2 + $0xaf] sm:$0xff] }
 0x112   : > { %v1586_v27 = vadd.f32 %v1554_v63, %v1482_v17  ;;  %v1658_v29 = vmul.f32 %v2865_v47, %v1618_v9  ;;  %v1451_v30 = vmul.f32 %v2848_v32, %v2992_v12  ;;  %771 = vst.msk [vmem:[#allocation2 + $0x170] sm:$0xff] %vm319_vm1, %v666_v55  ;;  %v596_v44 = vpop.f32.mrb[23].mxu0  ;;  %v1555_v36 = vmul.f32 %v2840_v26, %v3002_v19  ;;  %v3057_v55 = vld [vmem:[#allocation2 + $0xb0] sm:$0xff] }
 0x113   : > { %v1378_v34 = vadd.f32 %v1346_v18, %v1274_v22  ;;  %770 = vst.msk [vmem:[#allocation2 + $0x168] sm:$0xff] %vm319_vm1, %v665_v24  ;;  %v1067_v37 = vadd.f32 %v1035_v20, %v963_v21  ;;  %v828_v38 = vmul.f32 %v2786_v40, %v2928_v60  ;;  %v1659_v43 = vmul.f32 %v2865_v47, %v3006_v23 }
 0x114   : > { %v1690_v39 = vadd.f32 %v1658_v29, %v1586_v27  ;;  %v1243_v13 = vmul.f32 %v2821_v7, %v2971_v50  ;;  %v932_v45 = vmul.f32 %v2791_v42, %v2940_v5  ;;  %v1347_v51 = vmul.f32 %v2826_v11, %v1618_v9 }
 0x115   : > { %v1483_v33 = vadd.f32 %v1451_v30, %v1378_v34  ;;  %v1171_v48 = vadd.f32 %v1139_v28, %v1067_v37  ;;  %v1452_v52 = vmul.f32 %v2848_v32, %v3014_v31  ;;  %v3030_v53 = vpop.f32.mrb[24].mxu0  ;;  %v1036_v57 = vmul.f32 %v2801_v54, %v2946_v15  ;;  %v3079_v37 = vld [vmem:[#allocation2 + $0xc7] sm:$0xff] }
 0x116   : > { %v1729_v60 = vadd.f32 %v2904_v25, %v1690_v39  ;;  %v964_v56 = vadd.f32 %v932_v45, %v828_v38  ;;  %v1140_v58 = vmul.f32 %v2816_v6, %v2992_v12  ;;  %v3037_v59 = vpop.f32.mrb[25].mxu0  ;;  %v1244_v63 = vmul.f32 %v2821_v7, %v3002_v19 }
 0x117   : > { %v1587_v5 = vadd.f32 %v1555_v36, %v1483_v33  ;;  %v1275_v62 = vadd.f32 %v1243_v13, %v1171_v48  ;;  %v602_v0 = vadd.f32 %v2410_v61, %v2780_v35  ;;  %v597_v15 = vadd.f32 %v2780_v35, %v596_v44  ;;  %v3068_v61 = vld [vmem:[#allocation2 + $0xb1] sm:$0xff] }
 0x118   : > { %2431 = vmatprep.mubr.msk.f32.mxu1 %vm319_vm1, %v1729_v60  ;;  %v1068_v2 = vadd.f32 %v1036_v57, %v964_v56  ;;  %v829_v3 = vmul.f32 %v2786_v40, %v2969_v46  ;;  %v933_v4 = vmul.f32 %v2791_v42, %v2971_v50  ;;  %v1037_v16 = vmul.f32 %v2801_v54, %v1618_v9 }
 0x119   : > { %v1691_v8 = vadd.f32 %v1659_v43, %v1587_v5  ;;  %v1379_v10 = vadd.f32 %v1347_v51, %v1275_v62  ;;  %v668_v41 = vmax.f32 %v602_v0, 0.0  ;;  %v3055_v17 = vpop.f32.mrb[26].mxu0  ;;  %v667_v20 = vmax.f32 %v597_v15, 0.0  ;;  %v3091_v51 = vld [vmem:[#allocation2 + $0xc8] sm:$0xff] }
 0x11a   : > { %v1172_v18 = vadd.f32 %v1140_v58, %v1068_v2  ;;  %v965_v22 = vadd.f32 %v933_v4, %v829_v3  ;;  %v1141_v46 = vmul.f32 %v2816_v6, %v3014_v31  ;;  %v3061_v24 = vpop.f32.mrb[27].mxu0  ;;  %v1556_v28 = vmul.f32 %v2840_v26, %v3043_v1 }
 0x11b   : > { %v1730_v50 = vadd.f32 %v2904_v25, %v1691_v8  ;;  %v1484_v21 = vadd.f32 %v1452_v52, %v1379_v10  ;;  %v1660_v9 = vmul.f32 %v2865_v47, %v3045_v49  ;;  %773 = vst.msk [vmem:[#allocation2 + $0x190] sm:$0xff] %vm319_vm1, %v668_v41  ;;  %v1348_v29 = vmul.f32 %v2826_v11, %v3006_v23 }
 0x11c   : > { %v1276_v27 = vadd.f32 %v1244_v63, %v1172_v18  ;;  %v1453_v30 = vmul.f32 %v2848_v32, %v3052_v14  ;;  %772 = vst.msk [vmem:[#allocation2 + $0x188] sm:$0xff] %vm319_vm1, %v667_v20  ;;  %v1069_v44 = vadd.f32 %v1037_v16, %v965_v22  ;;  %v1557_v36 = vmul.f32 %v2840_v26, %v3057_v55  ;;  %v1622_v16 = vld [vmem:[#allocation2 + $0xc9] sm:$0xff] }
 0x11d   : > { %2432 = vmatmul.mubr.msk.f32.gmra.mrb[4].mxu1 %vm319_vm1, %v1730_v50  ;;  %v1588_v34 = vadd.f32 %v1556_v28, %v1484_v21  ;;  %v830_v38 = vmul.f32 %v2786_v40, %v2992_v12  ;;  %v934_v39 = vmul.f32 %v2791_v42, %v3002_v19  ;;  %v3085_v43 = vpop.f32.mrb[28].mxu0  ;;  %v1661_v45 = vmul.f32 %v2865_v47, %v3068_v61  ;;  %v3125_v21 = vld [vmem:[#allocation2 + $0xd0] sm:$0xff] }
 0x11e   : > { %v1380_v13 = vadd.f32 %v1348_v29, %v1276_v27  ;;  %v1173_v33 = vadd.f32 %v1141_v46, %v1069_v44  ;;  %v1245_v48 = vmul.f32 %v2821_v7, %v3043_v1  ;;  %v3093_v52 = vpop.f32.mrb[29].mxu0  ;;  %v1038_v12 = vmul.f32 %v2801_v54, %v3006_v23  ;;  %v3127_v27 = vld [vmem:[#allocation2 + $0xd1] sm:$0xff] }
 0x11f   : > { %v1692_v60 = vadd.f32 %v1660_v9, %v1588_v34  ;;  %v966_v56 = vadd.f32 %v934_v39, %v830_v38  ;;  %v1142_v19 = vmul.f32 %v2816_v6, %v3052_v14  ;;  %v1349_v5 = vmul.f32 %v2826_v11, %v3045_v49  ;;  %v3139_v39 = vld [vmem:[#allocation2 + $0xe7] sm:$0xff] }
 0x120   : > { %v1485_v57 = vadd.f32 %v1453_v30, %v1380_v13  ;;  %v1277_v58 = vadd.f32 %v1245_v48, %v1173_v33  ;;  %v1454_v62 = vmul.f32 %v2848_v32, %v3079_v37  ;;  %v1558_v0 = vmul.f32 %v2840_v26, %v3091_v51 }
 0x121   : > { %v1731_v63 = vadd.f32 %v2904_v25, %v1692_v60  ;;  %v1070_v2 = vadd.f32 %v1038_v12, %v966_v56  ;;  %v612_v23 = vadd.f32 %v3030_v53, %v2780_v35  ;;  %v3108_v15 = vpop.f32.mrb[30].mxu0  ;;  %v607_v8 = vadd.f32 %v2780_v35, %v3037_v59  ;;  %v3119_v53 = vld [vmem:[#allocation2 + $0xcf] sm:$0xff] }
 0x122   : > { %v1589_v3 = vadd.f32 %v1557_v36, %v1485_v57  ;;  %v1381_v4 = vadd.f32 %v1349_v5, %v1277_v58  ;;  %v831_v10 = vmul.f32 %v2786_v40, %v3014_v31  ;;  %v3114_v41 = vpop.f32.mrb[31].mxu0  ;;  %v1246_v20 = vmul.f32 %v2821_v7, %v3057_v55 }
 0x123   : > { %2434 = vmatprep.mubr.msk.f32.mxu1 %vm319_vm1, %v1731_v63  ;;  %v1174_v18 = vadd.f32 %v1142_v19, %v1070_v2  ;;  %v670_v22 = vmax.f32 %v612_v23, 0.0  ;;  %v935_v46 = vmul.f32 %v2791_v42, %v3043_v1  ;;  %v1350_v31 = vmul.f32 %v2826_v11, %v3068_v61 }
 0x124   : > { %v1693_v50 = vadd.f32 %v1661_v45, %v1589_v3  ;;  %v1486_v59 = vadd.f32 %v1454_v62, %v1381_v4  ;;  %v669_v28 = vmax.f32 %v607_v8, 0.0  ;;  %v1039_v30 = vmul.f32 %v2801_v54, %v3045_v49  ;;  %v1520_v4 = vld [vmem:[#allocation2 + $0xe8] sm:$0xff] }
 0x125   : > { %v1278_v9 = vadd.f32 %v1246_v20, %v1174_v18  ;;  %775 = vst.msk [vmem:[#allocation2 + $0x1b0] sm:$0xff] %vm319_vm1, %v670_v22  ;;  %v967_v29 = vadd.f32 %v935_v46, %v831_v10  ;;  %v1143_v1 = vmul.f32 %v2816_v6, %v3079_v37  ;;  %v1662_v36 = vmul.f32 %v2865_v47, %v1622_v16  ;;  %v3165_v8 = vld [vmem:[#allocation2 + $0xe9] sm:$0xff] }
 0x126   : > { %v1732_v44 = vadd.f32 %v2904_v25, %v1693_v50  ;;  %v1590_v34 = vadd.f32 %v1558_v0, %v1486_v59  ;;  %v1455_v38 = vmul.f32 %v2848_v32, %v3119_v53  ;;  %774 = vst.msk [vmem:[#allocation2 + $0x1a8] sm:$0xff] %vm319_vm1, %v669_v28  ;;  %v1559_v45 = vmul.f32 %v2840_v26, %v3125_v21  ;;  %v3173_v50 = vld [vmem:[#allocation2 + $0xef] sm:$0xff] }
 0x127   : > { %v1382_v13 = vadd.f32 %v1350_v31, %v1278_v9  ;;  %v1071_v49 = vadd.f32 %v1039_v30, %v967_v29  ;;  %v832_v33 = vmul.f32 %v2786_v40, %v3052_v14  ;;  %v1663_v60 = vmul.f32 %v2865_v47, %v3127_v27  ;;  %v3176_v28 = vld [vmem:[#allocation2 + $0xf0] sm:$0xff] }
 0x128   : > { %2435 = vmatmul.mubr.msk.f32.gmra.mrb[6].mxu1 %vm319_vm1, %v1732_v44  ;;  %v1694_v48 = vadd.f32 %v1662_v36, %v1590_v34  ;;  %v1247_v56 = vmul.f32 %v2821_v7, %v3091_v51  ;;  %v936_v12 = vmul.f32 %v2791_v42, %v3057_v55  ;;  %v1351_v58 = vmul.f32 %v2826_v11, %v1622_v16  ;;  %v3184_v44 = vld [vmem:[#allocation2 + $0xf1] sm:$0xff] }
 0x129   : > { %v1487_v19 = vadd.f32 %v1455_v38, %v1382_v13  ;;  %v1175_v57 = vadd.f32 %v1143_v1, %v1071_v49  ;;  %v1456_v5 = vmul.f32 %v2848_v32, %v3139_v39  ;;  %v1040_v63 = vmul.f32 %v2801_v54, %v3068_v61  ;;  %v3195_v49 = vld [vmem:[#allocation2 + $0x107] sm:$0xff] }
 0x12a   : > { %v1733_v14 = vadd.f32 %v2904_v25, %v1694_v48  ;;  %v968_v62 = vadd.f32 %v936_v12, %v832_v33  ;;  %v1144_v0 = vmul.f32 %v2816_v6, %v3119_v53  ;;  %v1248_v55 = vmul.f32 %v2821_v7, %v3125_v21 }
 0x12b   : > { %v1591_v2 = vadd.f32 %v1559_v45, %v1487_v19  ;;  %v1279_v23 = vadd.f32 %v1247_v56, %v1175_v57  ;;  %v622_v3 = vadd.f32 %v3055_v17, %v2780_v35  ;;  %v617_v61 = vadd.f32 %v2780_v35, %v3061_v24  ;;  %v3204_v57 = vld [vmem:[#allocation2 + $0x108] sm:$0xff] }
 0x12c   : > { %2437 = vmatprep.mubr.msk.f32.mxu1 %vm319_vm1, %v1733_v14  ;;  %v1072_v10 = vadd.f32 %v1040_v63, %v968_v62  ;;  %v833_v18 = vmul.f32 %v2786_v40, %v3079_v37  ;;  %v937_v20 = vmul.f32 %v2791_v42, %v3091_v51  ;;  %v1041_v59 = vmul.f32 %v2801_v54, %v1622_v16 }
 0x12d   : > { %v1695_v22 = vadd.f32 %v1663_v60, %v1591_v2  ;;  %v1383_v46 = vadd.f32 %v1351_v58, %v1279_v23  ;;  %v672_v17 = vmax.f32 %v622_v3, 0.0  ;;  %v671_v9 = vmax.f32 %v617_v61, 0.0 }
 0x12e   : > { %v1176_v31 = vadd.f32 %v1144_v0, %v1072_v10  ;;  %v969_v29 = vadd.f32 %v937_v20, %v833_v18  ;;  %v1145_v24 = vmul.f32 %v2816_v6, %v3139_v39  ;;  %v1560_v51 = vmul.f32 %v2840_v26, %v1520_v4  ;;  %v1626_v20 = vld [vmem:[#allocation2 + $0x109] sm:$0xff] }
 0x12f   : > { %v1734_v37 = vadd.f32 %v2904_v25, %v1695_v22  ;;  %v1488_v30 = vadd.f32 %v1456_v5, %v1383_v46  ;;  %v1664_v1 = vmul.f32 %v2865_v47, %v3165_v8  ;;  %777 = vst.msk [vmem:[#allocation2 + $0x1d0] sm:$0xff] %vm319_vm1, %v672_v17  ;;  %v1352_v34 = vmul.f32 %v2826_v11, %v3127_v27  ;;  %v3226_v17 = vld [vmem:[#allocation2 + $0x10f] sm:$0xff] }
 0x130   : > { %v1280_v16 = vadd.f32 %v1248_v55, %v1176_v31  ;;  %v1457_v36 = vmul.f32 %v2848_v32, %v3173_v50  ;;  %776 = vst.msk [vmem:[#allocation2 + $0x1c8] sm:$0xff] %vm319_vm1, %v671_v9  ;;  %v1073_v38 = vadd.f32 %v1041_v59, %v969_v29  ;;  %v1561_v45 = vmul.f32 %v2840_v26, %v3176_v28  ;;  %v3231_v29 = vld [vmem:[#allocation2 + $0x110] sm:$0xff] }
 0x131   : > { %2438 = vmatmul.mubr.msk.f32.gmra.mrb[8].mxu1 %vm319_vm1, %v1734_v37  ;;  %v1592_v13 = vadd.f32 %v1560_v51, %v1488_v30  ;;  %v834_v33 = vmul.f32 %v2786_v40, %v3119_v53  ;;  %v938_v48 = vmul.f32 %v2791_v42, %v3125_v21  ;;  %v1665_v56 = vmul.f32 %v2865_v47, %v3184_v44  ;;  %v3233_v37 = vld [vmem:[#allocation2 + $0x111] sm:$0xff] }
 0x132   : > { %v1384_v60 = vadd.f32 %v1352_v34, %v1280_v16  ;;  %v1177_v12 = vadd.f32 %v1145_v24, %v1073_v38  ;;  %v1249_v19 = vmul.f32 %v2821_v7, %v1520_v4  ;;  %v1042_v14 = vmul.f32 %v2801_v54, %v3127_v27  ;;  %v3245_v38 = vld [vmem:[#allocation2 + $0x127] sm:$0xff] }
 0x133   : > { %v1696_v58 = vadd.f32 %v1664_v1, %v1592_v13  ;;  %v970_v5 = vadd.f32 %v938_v48, %v834_v33  ;;  %v1146_v53 = vmul.f32 %v2816_v6, %v3173_v50  ;;  %v1353_v21 = vmul.f32 %v2826_v11, %v3165_v8 }
 0x134   : > { %v1489_v62 = vadd.f32 %v1457_v36, %v1384_v60  ;;  %v1281_v63 = vadd.f32 %v1249_v19, %v1177_v12  ;;  %v1458_v0 = vmul.f32 %v2848_v32, %v3195_v49  ;;  %v1562_v23 = vmul.f32 %v2840_v26, %v3204_v57 }
 0x135   : > { %v1735_v2 = vadd.f32 %v2904_v25, %v1696_v58  ;;  %v1074_v55 = vadd.f32 %v1042_v14, %v970_v5  ;;  %v632_v27 = vadd.f32 %v3085_v43, %v2780_v35  ;;  %v627_v61 = vadd.f32 %v2780_v35, %v3093_v52 }
 0x136   : > { %v1593_v3 = vadd.f32 %v1561_v45, %v1489_v62  ;;  %v1385_v10 = vadd.f32 %v1353_v21, %v1281_v63  ;;  %v835_v18 = vmul.f32 %v2786_v40, %v3139_v39  ;;  %v1250_v46 = vmul.f32 %v2821_v7, %v3176_v28 }
 0x137   : > { %2440 = vmatprep.mubr.msk.f32.mxu1 %vm319_vm1, %v1735_v2  ;;  %v1178_v22 = vadd.f32 %v1146_v53, %v1074_v55  ;;  %v674_v59 = vmax.f32 %v632_v27, 0.0  ;;  %v939_v43 = vmul.f32 %v2791_v42, %v1520_v4  ;;  %v1354_v52 = vmul.f32 %v2826_v11, %v3184_v44 }
 0x138   : > { %v1697_v31 = vadd.f32 %v1665_v56, %v1593_v3  ;;  %v1490_v9 = vadd.f32 %v1458_v0, %v1385_v10  ;;  %v673_v39 = vmax.f32 %v627_v61, 0.0  ;;  %v1043_v51 = vmul.f32 %v2801_v54, %v3165_v8 }
 0x139   : > { %v1282_v24 = vadd.f32 %v1250_v46, %v1178_v22  ;;  %779 = vst.msk [vmem:[#allocation2 + $0x1f0] sm:$0xff] %vm319_vm1, %v674_v59  ;;  %v971_v30 = vadd.f32 %v939_v43, %v835_v18  ;;  %v1147_v4 = vmul.f32 %v2816_v6, %v3195_v49  ;;  %v1666_v34 = vmul.f32 %v2865_v47, %v1626_v20  ;;  %v1628_v18 = vld [vmem:[#allocation2 + $0x129] sm:$0xff] }
 0x13a   : > { %v1736_v1 = vadd.f32 %v2904_v25, %v1697_v31  ;;  %v1594_v16 = vadd.f32 %v1562_v23, %v1490_v9  ;;  %v1459_v36 = vmul.f32 %v2848_v32, %v3226_v17  ;;  %778 = vst.msk [vmem:[#allocation2 + $0x1e8] sm:$0xff] %vm319_vm1, %v673_v39  ;;  %v1563_v45 = vmul.f32 %v2840_v26, %v3231_v29  ;;  %v1524_v23 = vld [vmem:[#allocation2 + $0x128] sm:$0xff] }
 0x13b   : > { %v1386_v13 = vadd.f32 %v1354_v52, %v1282_v24  ;;  %v1075_v8 = vadd.f32 %v1043_v51, %v971_v30  ;;  %v836_v33 = vmul.f32 %v2786_v40, %v3173_v50  ;;  %v1667_v60 = vmul.f32 %v2865_v47, %v3233_v37  ;;  %v1421_v59 = vld [vmem:[#allocation2 + $0x12f] sm:$0xff] }
 0x13c   : > { %2441 = vmatmul.mubr.msk.f32.gmra.mrb[10].mxu1 %vm319_vm1, %v1736_v1  ;;  %v1698_v48 = vadd.f32 %v1666_v34, %v1594_v16  ;;  %v1251_v56 = vmul.f32 %v2821_v7, %v3204_v57  ;;  %v940_v12 = vmul.f32 %v2791_v42, %v3176_v28  ;;  %v1355_v5 = vmul.f32 %v2826_v11, %v1626_v20  ;;  %v1525_v52 = vld [vmem:[#allocation2 + $0x130] sm:$0xff] }
 0x13d   : > { %v1491_v19 = vadd.f32 %v1459_v36, %v1386_v13  ;;  %v1179_v58 = vadd.f32 %v1147_v4, %v1075_v8  ;;  %v1460_v14 = vmul.f32 %v2848_v32, %v3245_v38  ;;  %v1044_v62 = vmul.f32 %v2801_v54, %v3184_v44  ;;  %v1629_v4 = vld [vmem:[#allocation2 + $0x131] sm:$0xff]  ;;  %v3295_v8 = vld [vmem:[#allocation2 + $0x147] sm:$0xff] }
 0x13e   : > { %v1737_v50 = vadd.f32 %v2904_v25, %v1698_v48  ;;  %v972_v53 = vadd.f32 %v940_v12, %v836_v33  ;;  %v1148_v63 = vmul.f32 %v2816_v6, %v3226_v17  ;;  %v1252_v28 = vmul.f32 %v2821_v7, %v3231_v29  ;;  %v3297_v48 = vld [vmem:[#allocation2 + $0x148] sm:$0xff] }
 0x13f   : > { %v1595_v21 = vadd.f32 %v1563_v45, %v1491_v19  ;;  %v1283_v0 = vadd.f32 %v1251_v56, %v1179_v58  ;;  %v642_v2 = vadd.f32 %v3108_v15, %v2780_v35  ;;  %v637_v27 = vadd.f32 %v2780_v35, %v3114_v41  ;;  %v3304_v19 = vld [vmem:[#allocation2 + $0x149] sm:$0xff] }
 0x140   : > { %2443 = vmatprep.mubr.msk.f32.mxu1 %vm319_vm1, %v1737_v50  ;;  %v1076_v55 = vadd.f32 %v1044_v62, %v972_v53  ;;  %v837_v44 = vmul.f32 %v2786_v40, %v3195_v49  ;;  %v941_v3 = vmul.f32 %v2791_v42, %v3204_v57  ;;  %v1045_v46 = vmul.f32 %v2801_v54, %v1626_v20 }
 0x141   : > { %v1699_v10 = vadd.f32 %v1667_v60, %v1595_v21  ;;  %v1387_v61 = vadd.f32 %v1355_v5, %v1283_v0  ;;  %v676_v22 = vmax.f32 %v642_v2, 0.0  ;;  %v675_v43 = vmax.f32 %v637_v27, 0.0  ;;  %v3318_v21 = vld [vmem:[#allocation2 + $0x14f] sm:$0xff]  ;;  %v3323_v0 = vld [vmem:[%s3705_s3 + $0x1] ss:$0 sm:$0xff] }
 0x142   : > { %v1180_v15 = vadd.f32 %v1148_v63, %v1076_v55  ;;  %v973_v31 = vadd.f32 %v941_v3, %v837_v44  ;;  %v1149_v9 = vmul.f32 %v2816_v6, %v3245_v38  ;;  %v1564_v49 = vmul.f32 %v2840_v26, %v1524_v23 }
 0x143   : > { %v1738_v35 = vadd.f32 %v2904_v25, %v1699_v10  ;;  %v1492_v41 = vadd.f32 %v1460_v14, %v1387_v61  ;;  %781 = vst.msk [vmem:[#allocation2 + $0x210] sm:$0xff] %vm319_vm1, %v676_v22  ;;  %v1668_v57 = vmul.f32 %v2865_v47, %v1628_v18  ;;  %v1356_v20 = vmul.f32 %v2826_v11, %v3233_v37  ;;  %v1527_v10 = vld [vmem:[#allocation2 + $0x150] sm:$0xff] }
 0x144   : > { %v1284_v39 = vadd.f32 %v1252_v28, %v1180_v15  ;;  %780 = vst.msk [vmem:[#allocation2 + $0x208] sm:$0xff] %vm319_vm1, %v675_v43  ;;  %v1077_v24 = vadd.f32 %v1045_v46, %v973_v31  ;;  %v1461_v51 = vmul.f32 %v2848_v32, %v1421_v59  ;;  %v838_v1 = vmul.f32 %v2786_v40, %v3226_v17 }
 0x145   : > { %2444 = vmatmul.mubr.msk.f32.gmra.mrb[12].mxu1 %vm319_vm1, %v1738_v35  ;;  %v1596_v30 = vadd.f32 %v1564_v49, %v1492_v41  ;;  %v942_v16 = vmul.f32 %v2791_v42, %v3231_v29  ;;  %v1565_v36 = vmul.f32 %v2840_v26, %v1525_v52  ;;  %v1253_v45 = vmul.f32 %v2821_v7, %v1524_v23  ;;  %v1631_v35 = vld [vmem:[#allocation2 + $0x151] sm:$0xff] }
 0x146   : > { %v1388_v34 = vadd.f32 %v1356_v20, %v1284_v39  ;;  %v1181_v13 = vadd.f32 %v1149_v9, %v1077_v24  ;;  %v1046_v56 = vmul.f32 %v2801_v54, %v3233_v37  ;;  %v1150_v40 = vmul.f32 %v2816_v6, %v1421_v59  ;;  %v3312_v37 = vld [vmem:[%s3705_s3] ss:$0 sm:$0xff]  ;;  %v1528_v24 = vld [vmem:[#allocation2 + $0x168] sm:$0xff] }
 0x147   : > { %v1700_v33 = vadd.f32 %v1668_v57, %v1596_v30  ;;  %v974_v60 = vadd.f32 %v942_v16, %v838_v1  ;;  %v1669_v42 = vmul.f32 %v2865_v47, %v1629_v4  ;;  %v1357_v12 = vmul.f32 %v2826_v11, %v1628_v18  ;;  %v3347_v57 = vld [vmem:[%s3705_s3 + $0x2] ss:$0 sm:$0xff]  ;;  %v3351_v30 = vld [vmem:[#allocation2 + $0x169] sm:$0xff] }
 0x148   : > { %v1493_v17 = vadd.f32 %v1461_v51, %v1388_v34  ;;  %v1285_v29 = vadd.f32 %v1253_v45, %v1181_v13  ;;  %v1462_v5 = vmul.f32 %v2848_v32, %v3295_v8  ;;  %v839_v50 = vmul.f32 %v3312_v37, %v3245_v38  ;;  %v3356_v51 = vld [vmem:[%s3705_s3 + $0x3] ss:$0 sm:$0xff] }
 0x149   : > { %v1739_v58 = vadd.f32 %v2904_v25, %v1700_v33  ;;  %v1078_v14 = vadd.f32 %v1046_v56, %v974_v60  ;;  %v1566_v63 = vmul.f32 %v2840_v26, %v3297_v48  ;;  %v943_v28 = vmul.f32 %v3323_v0, %v1524_v23 }
 0x14a   : > { %v1597_v53 = vadd.f32 %v1565_v36, %v1493_v17  ;;  %v1389_v62 = vadd.f32 %v1357_v12, %v1285_v29  ;;  %v1670_v2 = vmul.f32 %v2865_v47, %v3304_v19  ;;  %v1254_v55 = vmul.f32 %v2821_v7, %v1525_v52 }
 0x14b   : > { %2446 = vmatprep.mubr.msk.f32.mxu1 %vm319_vm1, %v1739_v58  ;;  %v1182_v38 = vadd.f32 %v1150_v40, %v1078_v14  ;;  %v1047_v27 = vmul.f32 %v2801_v54, %v1628_v18  ;;  %v975_v61 = vadd.f32 %v943_v28, %v839_v50  ;;  %v1151_v22 = vmul.f32 %v2816_v6, %v3295_v8  ;;  %v3338_v18 = vld [vmem:[#allocation2 + $0x167] sm:$0xff]  ;;  %v3384_v58 = vld [vmem:[%s3705_s3 + $0x4] ss:$0 sm:$0xff]  ;;  %v3388_v50 = vld [vmem:[#allocation2 + $0x171] sm:$0xff] }
 0x14c   : > { %v1701_v44 = vadd.f32 %v1669_v42, %v1597_v53  ;;  %v1494_v3 = vadd.f32 %v1462_v5, %v1389_v62  ;;  %v1358_v23 = vmul.f32 %v2826_v11, %v1629_v4  ;;  %v1463_v15 = vmul.f32 %v2848_v32, %v3318_v21  ;;  %v3376_v42 = vld [vmem:[#allocation2 + $0x16f] sm:$0xff] }
 0x14d   : > { %v1286_v46 = vadd.f32 %v1254_v55, %v1182_v38  ;;  %v840_v43 = vmul.f32 %v3312_v37, %v1421_v59  ;;  %v1079_v54 = vadd.f32 %v1047_v27, %v975_v61  ;;  %v944_v41 = vmul.f32 %v3323_v0, %v1525_v52  ;;  %v1529_v5 = vld [vmem:[#allocation2 + $0x170] sm:$0xff]  ;;  %v3410_v61 = vld [vmem:[#allocation2 + $0x187] sm:$0xff] }
 0x14e   : > { %v1740_v31 = vadd.f32 %v2904_v25, %v1701_v44  ;;  %v1598_v9 = vadd.f32 %v1566_v63, %v1494_v3  ;;  %v1567_v6 = vmul.f32 %v2840_v26, %v1527_v10  ;;  %v1255_v11 = vmul.f32 %v2821_v7, %v3297_v48 }
 0x14f   : > { %v1390_v49 = vadd.f32 %v1358_v23, %v1286_v46  ;;  %v1048_v59 = vmul.f32 %v3347_v57, %v1629_v4  ;;  %v1183_v20 = vadd.f32 %v1151_v22, %v1079_v54  ;;  %v976_v52 = vadd.f32 %v944_v41, %v840_v43  ;;  %v3364_v4 = vld [vmem:[%s3705_s3 + $0x5] ss:$0 sm:$0xff] }
 0x150   : > { %2447 = vmatmul.mubr.msk.f32.gmra.mrb[14].mxu1 %vm319_vm1, %v1740_v31  ;;  %v1702_v39 = vadd.f32 %v1670_v2, %v1598_v9  ;;  %v1152_v7 = vmul.f32 %v3356_v51, %v3318_v21  ;;  %v1671_v16 = vmul.f32 %v2865_v47, %v1631_v35  ;;  %v1359_v34 = vmul.f32 %v3364_v4, %v3304_v19  ;;  %v3397_v2 = vld [vmem:[%s3705_s3 + $0x6] ss:$0 sm:$0xff] }
 0x151   : > { %v1495_v1 = vadd.f32 %v1463_v15, %v1390_v49  ;;  %v1464_v36 = vmul.f32 %v2848_v32, %v3338_v18  ;;  %v1287_v45 = vadd.f32 %v1255_v11, %v1183_v20  ;;  %v1080_v33 = vadd.f32 %v1048_v59, %v976_v52  ;;  %v1530_v11 = vld [vmem:[#allocation2 + $0x188] sm:$0xff] }
 0x152   : > { %v1741_v13 = vadd.f32 %v2904_v25, %v1702_v39  ;;  %v841_v60 = vmul.f32 %v3312_v37, %v3295_v8  ;;  %v1568_v40 = vmul.f32 %v2840_v26, %v1528_v24  ;;  %v1672_v17 = vmul.f32 %v2865_v47, %v3351_v30  ;;  %v1634_v59 = vld [vmem:[#allocation2 + $0x189] sm:$0xff] }
 0x153   : > { %v1599_v56 = vadd.f32 %v1567_v6, %v1495_v1  ;;  %v945_v29 = vmul.f32 %v3323_v0, %v3297_v48  ;;  %v1391_v32 = vadd.f32 %v1359_v34, %v1287_v45  ;;  %v1184_v12 = vadd.f32 %v1152_v7, %v1080_v33  ;;  %v1531_v45 = vld [vmem:[#allocation2 + $0x190] sm:$0xff] }
 0x154   : > { %2449 = vmatprep.mubr.msk.f32.mxu1 %vm319_vm1, %v1741_v13  ;;  %v1256_v8 = vmul.f32 %v3384_v58, %v1527_v10  ;;  %v1360_v26 = vmul.f32 %v3364_v4, %v1631_v35  ;;  %v1049_v48 = vmul.f32 %v3347_v57, %v3304_v19  ;;  %v1153_v62 = vmul.f32 %v3356_v51, %v3338_v18  ;;  %v3407_v19 = vld [vmem:[%s3705_s3 + $0x7] ss:$0 sm:$0xff] }
 0x155   : > { %v1703_v14 = vadd.f32 %v1671_v16, %v1599_v56  ;;  %v977_v53 = vadd.f32 %v945_v29, %v841_v60  ;;  %v1496_v63 = vadd.f32 %v1464_v36, %v1391_v32  ;;  %v1465_v38 = vmul.f32 %v3397_v2, %v3376_v42  ;;  %v3429_v16 = vld [vmem:[#allocation2 + $0x18f] sm:$0xff]  ;;  %v3440_v56 = vld [vmem:[%s3705_s3 + $0x8] ss:$0 sm:$0xff] }
 0x156   : > { %v1288_v28 = vadd.f32 %v1256_v8, %v1184_v12  ;;  %v842_v55 = vmul.f32 %v3312_v37, %v3318_v21  ;;  %v1569_v44 = vmul.f32 %v3407_v19, %v1529_v5  ;;  %v946_v22 = vmul.f32 %v3323_v0, %v1527_v10  ;;  %v1635_v12 = vld [vmem:[#allocation2 + $0x191] sm:$0xff] }
 0x157   : > { %v1742_v27 = vadd.f32 %v2904_v25, %v1703_v14  ;;  %v1081_v3 = vadd.f32 %v1049_v48, %v977_v53  ;;  %v1600_v46 = vadd.f32 %v1568_v40, %v1496_v63  ;;  %v1673_v15 = vmul.f32 %v2865_v47, %v3388_v50 }
 0x158   : > { %v1392_v23 = vadd.f32 %v1360_v26, %v1288_v28  ;;  %v1257_v21 = vmul.f32 %v3384_v58, %v1528_v24  ;;  %v978_v31 = vadd.f32 %v946_v22, %v842_v55  ;;  %v1050_v9 = vmul.f32 %v3347_v57, %v1631_v35  ;;  %v1428_v55 = vld [vmem:[#allocation2 + $0x1a7] sm:$0xff] }
 0x159   : > { %2450 = vmatmul.mubr.msk.f32.gmra.mrb[16].mxu1 %vm319_vm1, %v1742_v27  ;;  %v1185_v43 = vadd.f32 %v1153_v62, %v1081_v3  ;;  %v1154_v54 = vmul.f32 %v3356_v51, %v3376_v42  ;;  %v1704_v41 = vadd.f32 %v1672_v17, %v1600_v46  ;;  %v1361_v10 = vmul.f32 %v3364_v4, %v3351_v30 }
 0x15a   : > { %v1497_v49 = vadd.f32 %v1465_v38, %v1392_v23  ;;  %v1466_v6 = vmul.f32 %v3397_v2, %v3410_v61  ;;  %v1082_v39 = vadd.f32 %v1050_v9, %v978_v31  ;;  %v843_v20 = vmul.f32 %v3312_v37, %v3338_v18 }
 0x15b   : > { %v1289_v47 = vadd.f32 %v1257_v21, %v1185_v43  ;;  %v947_v35 = vmul.f32 %v3323_v0, %v1528_v24  ;;  %v1743_v52 = vadd.f32 %v2904_v25, %v1704_v41  ;;  %v1258_v1 = vmul.f32 %v3384_v58, %v1529_v5  ;;  %v1636_v21 = vld [vmem:[#allocation2 + $0x1a9] sm:$0xff] }
 0x15c   : > { %v1601_v7 = vadd.f32 %v1569_v44, %v1497_v49  ;;  %v1051_v34 = vmul.f32 %v3347_v57, %v3351_v30  ;;  %v1186_v13 = vadd.f32 %v1154_v54, %v1082_v39  ;;  %v1155_v60 = vmul.f32 %v3356_v51, %v3410_v61 }
 0x15d   : > { %v1393_v36 = vadd.f32 %v1361_v10, %v1289_v47  ;;  %v979_v33 = vadd.f32 %v947_v35, %v843_v20  ;;  %2452 = vmatprep.mubr.msk.f32.mxu1 %vm319_vm1, %v1743_v52  ;;  %v1570_v24 = vmul.f32 %v3407_v19, %v1530_v11  ;;  %v1674_v40 = vmul.f32 %v3440_v56, %v1634_v59 }
 0x15e   : > { %v1705_v18 = vadd.f32 %v1673_v15, %v1601_v7  ;;  %v1362_v30 = vmul.f32 %v3364_v4, %v3388_v50  ;;  %v1290_v29 = vadd.f32 %v1258_v1, %v1186_v13  ;;  %v1467_v32 = vmul.f32 %v3397_v2, %v3429_v16  ;;  %v1532_v15 = vld [vmem:[#allocation2 + $0x1a8] sm:$0xff]  ;;  %v1533_v1 = vld [vmem:[#allocation2 + $0x1b0] sm:$0xff] }
 0x15f   : > { %v1498_v17 = vadd.f32 %v1466_v6, %v1393_v36  ;;  %v1083_v8 = vadd.f32 %v1051_v34, %v979_v33  ;;  %v1571_v14 = vmul.f32 %v3407_v19, %v1531_v45  ;;  %v844_v53 = vmul.f32 %v3312_v37, %v3376_v42  ;;  %v1429_v6 = vld [vmem:[#allocation2 + $0x1af] sm:$0xff] }
 0x160   : > { %v1744_v26 = vadd.f32 %v2904_v25, %v1705_v18  ;;  %v948_v48 = vmul.f32 %v3323_v0, %v1529_v5  ;;  %v1394_v63 = vadd.f32 %v1362_v30, %v1290_v29  ;;  %v1259_v38 = vmul.f32 %v3384_v58, %v1530_v11  ;;  %v1637_v18 = vld [vmem:[#allocation2 + $0x1b1] sm:$0xff] }
 0x161   : > { %v1602_v62 = vadd.f32 %v1570_v24, %v1498_v17  ;;  %v1187_v28 = vadd.f32 %v1155_v60, %v1083_v8  ;;  %v1675_v27 = vmul.f32 %v3440_v56, %v1635_v12  ;;  %v1052_v25 = vmul.f32 %v3347_v57, %v3388_v50  ;;  %v3467_v50 = vld [vmem:[%s3706_s4] ss:$0 sm:$0xff]  ;;  %v1430_v8 = vld [vmem:[#allocation2 + $0x1c7] sm:$0xff] }
 0x162   : > { %2453 = vmatmul.mubr.msk.f32.gmra.mrb[18].mxu1 %vm319_vm1, %v1744_v26  ;;  %v980_v44 = vadd.f32 %v948_v48, %v844_v53  ;;  %v1156_v3 = vmul.f32 %v3356_v51, %v3429_v16  ;;  %v1499_v22 = vadd.f32 %v1467_v32, %v1394_v63  ;;  %v1363_v46 = vmul.f32 %v3364_v4, %v1634_v59 }
 0x163   : > { %v1706_v42 = vadd.f32 %v1674_v40, %v1602_v62  ;;  %v1291_v5 = vadd.f32 %v1259_v38, %v1187_v28  ;;  %v1468_v23 = vmul.f32 %v3397_v2, %v1428_v55  ;;  %v845_v31 = vmul.f32 %v3312_v37, %v3410_v61  ;;  %v3489_v38 = vld [vmem:[#allocation2 + $0x1c9] sm:$0xff] }
 0x164   : > { %v1084_v43 = vadd.f32 %v1052_v25, %v980_v44  ;;  %v949_v9 = vmul.f32 %v3323_v0, %v1530_v11  ;;  %v1603_v41 = vadd.f32 %v1571_v14, %v1499_v22  ;;  %v1260_v10 = vmul.f32 %v3384_v58, %v1531_v45  ;;  %v1534_v14 = vld [vmem:[#allocation2 + $0x1c8] sm:$0xff] }
 0x165   : > { %v1745_v54 = vadd.f32 %v3467_v50, %v1706_v42  ;;  %v1395_v49 = vadd.f32 %v1363_v46, %v1291_v5  ;;  %v1053_v20 = vmul.f32 %v3347_v57, %v1634_v59  ;;  %v1157_v61 = vmul.f32 %v3356_v51, %v1428_v55  ;;  %v1431_v5 = vld [vmem:[#allocation2 + $0x1cf] sm:$0xff] }
 0x166   : > { %v1188_v47 = vadd.f32 %v1156_v3, %v1084_v43  ;;  %v981_v39 = vadd.f32 %v949_v9, %v845_v31  ;;  %v1707_v11 = vadd.f32 %v1675_v27, %v1603_v41  ;;  %v1572_v52 = vmul.f32 %v3407_v19, %v1532_v15 }
 0x167   : > { %2455 = vmatprep.mubr.msk.f32.mxu1 %vm319_vm1, %v1745_v54  ;;  %v1500_v35 = vadd.f32 %v1468_v23, %v1395_v49  ;;  %v1676_v7 = vmul.f32 %v3440_v56, %v1636_v21  ;;  %v1364_v36 = vmul.f32 %v3364_v4, %v1635_v12  ;;  %v1469_v13 = vmul.f32 %v3397_v2, %v1429_v6 }
 0x168   : > { %v1292_v34 = vadd.f32 %v1260_v10, %v1188_v47  ;;  %v1085_v33 = vadd.f32 %v1053_v20, %v981_v39  ;;  %v1746_v60 = vadd.f32 %v3467_v50, %v1707_v11  ;;  %v846_v24 = vmul.f32 %v3312_v37, %v3429_v16 }
 0x169   : > { %v1604_v59 = vadd.f32 %v1572_v52, %v1500_v35  ;;  %v950_v40 = vmul.f32 %v3323_v0, %v1531_v45  ;;  %v1573_v17 = vmul.f32 %v3407_v19, %v1533_v1  ;;  %v1261_v32 = vmul.f32 %v3384_v58, %v1532_v15  ;;  %v1639_v35 = vld [vmem:[#allocation2 + $0x1d1] sm:$0xff] }
 0x16a   : > { %v1396_v30 = vadd.f32 %v1364_v36, %v1292_v34  ;;  %v1189_v29 = vadd.f32 %v1157_v61, %v1085_v33  ;;  %2456 = vmatmul.mubr.msk.f32.gmra.mrb[20].mxu1 %vm319_vm1, %v1746_v60  ;;  %v1054_v48 = vmul.f32 %v3347_v57, %v1635_v12  ;;  %v1158_v62 = vmul.f32 %v3356_v51, %v1429_v6 }
 0x16b   : > { %v1708_v26 = vadd.f32 %v1676_v7, %v1604_v59  ;;  %v982_v53 = vadd.f32 %v950_v40, %v846_v24  ;;  %v1677_v16 = vmul.f32 %v3440_v56, %v1637_v18  ;;  %v1365_v28 = vmul.f32 %v3364_v4, %v1636_v21  ;;  %v3506_v7 = vld [vmem:[#allocation2 + $0x1e7] sm:$0xff] }
 0x16c   : > { %v1501_v63 = vadd.f32 %v1469_v13, %v1396_v30  ;;  %v1293_v45 = vadd.f32 %v1261_v32, %v1189_v29  ;;  %v1470_v44 = vmul.f32 %v3397_v2, %v1430_v8  ;;  %v847_v3 = vmul.f32 %v3312_v37, %v1428_v55  ;;  %v1535_v55 = vld [vmem:[#allocation2 + $0x1d0] sm:$0xff]  ;;  %v1536_v59 = vld [vmem:[#allocation2 + $0x1e8] sm:$0xff] }
 0x16d   : > { %v1747_v27 = vadd.f32 %v3467_v50, %v1708_v26  ;;  %v1086_v25 = vadd.f32 %v1054_v48, %v982_v53  ;;  %v1574_v12 = vmul.f32 %v3407_v19, %v1534_v14  ;;  %v951_v46 = vmul.f32 %v3323_v0, %v1532_v15  ;;  %v1640_v24 = vld [vmem:[#allocation2 + $0x1e9] sm:$0xff] }
 0x16e   : > { %v1605_v42 = vadd.f32 %v1573_v17, %v1501_v63  ;;  %v1397_v22 = vadd.f32 %v1365_v28, %v1293_v45  ;;  %v1678_v23 = vmul.f32 %v3440_v56, %v3489_v38  ;;  %v1262_v31 = vmul.f32 %v3384_v58, %v1533_v1  ;;  %v3523_v45 = vld [vmem:[#allocation2 + $0x1ef] sm:$0xff] }
 0x16f   : > { %2458 = vmatprep.mubr.msk.f32.mxu1 %vm319_vm1, %v1747_v27  ;;  %v1190_v43 = vadd.f32 %v1158_v62, %v1086_v25  ;;  %v1055_v9 = vmul.f32 %v3347_v57, %v1636_v21  ;;  %v983_v49 = vadd.f32 %v951_v46, %v847_v3  ;;  %v1159_v10 = vmul.f32 %v3356_v51, %v1430_v8 }
 0x170   : > { %v1709_v54 = vadd.f32 %v1677_v16, %v1605_v42  ;;  %v1502_v41 = vadd.f32 %v1470_v44, %v1397_v22  ;;  %v1366_v39 = vmul.f32 %v3364_v4, %v1637_v18  ;;  %v1471_v15 = vmul.f32 %v3397_v2, %v1431_v5  ;;  %v1537_v42 = vld [vmem:[#allocation2 + $0x1f0] sm:$0xff] }
 0x171   : > { %v1294_v47 = vadd.f32 %v1262_v31, %v1190_v43  ;;  %v848_v20 = vmul.f32 %v3312_v37, %v1429_v6  ;;  %v1087_v52 = vadd.f32 %v1055_v9, %v983_v49  ;;  %v952_v21 = vmul.f32 %v3323_v0, %v1533_v1 }
 0x172   : > { %v1748_v61 = vadd.f32 %v3467_v50, %v1709_v54  ;;  %v1606_v11 = vadd.f32 %v1574_v12, %v1502_v41  ;;  %v1575_v36 = vmul.f32 %v3407_v19, %v1535_v55  ;;  %v1263_v13 = vmul.f32 %v3384_v58, %v1534_v14 }
 0x173   : > { %v1398_v34 = vadd.f32 %v1366_v39, %v1294_v47  ;;  %v1056_v33 = vmul.f32 %v3347_v57, %v1637_v18  ;;  %v1191_v6 = vadd.f32 %v1159_v10, %v1087_v52  ;;  %v984_v40 = vadd.f32 %v952_v21, %v848_v20  ;;  %v1434_v10 = vld [vmem:[#allocation2 + $0x207] sm:$0xff] }
 0x174   : > { %2459 = vmatmul.mubr.msk.f32.gmra.mrb[22].mxu1 %vm319_vm1, %v1748_v61  ;;  %v1710_v60 = vadd.f32 %v1678_v23, %v1606_v11  ;;  %v1160_v30 = vmul.f32 %v3356_v51, %v1431_v5  ;;  %v1679_v29 = vmul.f32 %v3440_v56, %v1639_v35  ;;  %v1367_v1 = vmul.f32 %v3364_v4, %v3489_v38 }
 0x175   : > { %v1503_v17 = vadd.f32 %v1471_v15, %v1398_v34  ;;  %v1472_v32 = vmul.f32 %v3397_v2, %v3506_v7  ;;  %v1295_v26 = vadd.f32 %v1263_v13, %v1191_v6  ;;  %v1088_v53 = vadd.f32 %v1056_v33, %v984_v40  ;;  %v1538_v33 = vld [vmem:[#allocation2 + $0x208] sm:$0xff] }
 0x176   : > { %v1749_v18 = vadd.f32 %v3467_v50, %v1710_v60  ;;  %v849_v48 = vmul.f32 %v3312_v37, %v1430_v8  ;;  %v1576_v63 = vmul.f32 %v3407_v19, %v1536_v59  ;;  %v1680_v16 = vmul.f32 %v3440_v56, %v1640_v24  ;;  %v3529_v8 = vld [vmem:[#allocation2 + $0x1f1] sm:$0xff]  ;;  %v1642_v60 = vld [vmem:[#allocation2 + $0x209] sm:$0xff] }
 0x177   : > { %v1607_v62 = vadd.f32 %v1575_v36, %v1503_v17  ;;  %v953_v28 = vmul.f32 %v3323_v0, %v1534_v14  ;;  %v1399_v27 = vadd.f32 %v1367_v1, %v1295_v26  ;;  %v1192_v44 = vadd.f32 %v1160_v30, %v1088_v53  ;;  %v1435_v1 = vld [vmem:[#allocation2 + $0x20f] sm:$0xff] }
 0x178   : > { %2461 = vmatprep.mubr.msk.f32.mxu1 %vm319_vm1, %v1749_v18  ;;  %v1264_v25 = vmul.f32 %v3384_v58, %v1535_v55  ;;  %v1368_v3 = vmul.f32 %v3364_v4, %v1639_v35  ;;  %v1057_v46 = vmul.f32 %v3347_v57, %v3489_v38  ;;  %v1161_v23 = vmul.f32 %v3356_v51, %v3506_v7  ;;  %v1539_v53 = vld [vmem:[#allocation2 + $0x210] sm:$0xff] }
 0x179   : > { %v1711_v22 = vadd.f32 %v1679_v29, %v1607_v62  ;;  %v985_v12 = vadd.f32 %v953_v28, %v849_v48  ;;  %v1504_v14 = vadd.f32 %v1472_v32, %v1399_v27  ;;  %v1473_v31 = vmul.f32 %v3397_v2, %v3523_v45 }
 0x17a   : > { %v1296_v43 = vadd.f32 %v1264_v25, %v1192_v44  ;;  %v850_v9 = vmul.f32 %v3312_v37, %v1431_v5  ;;  %v1577_v41 = vmul.f32 %v3407_v19, %v1537_v42  ;;  %v954_v47 = vmul.f32 %v3323_v0, %v1535_v55 }
 0x17b   : > { %v1750_v54 = vadd.f32 %v3467_v50, %v1711_v22  ;;  %v1089_v49 = vadd.f32 %v1057_v46, %v985_v12  ;;  %v1608_v39 = vadd.f32 %v1576_v63, %v1504_v14  ;;  %v1681_v15 = vmul.f32 %v3440_v56, %v3529_v8  ;;  %v1436_v22 = vld [vmem:[#allocation2 + $0x227] sm:$0xff] }
 0x17c   : > { %v1400_v38 = vadd.f32 %v1368_v3, %v1296_v43  ;;  %v1265_v20 = vmul.f32 %v3384_v58, %v1536_v59  ;;  %v986_v11 = vadd.f32 %v954_v47, %v850_v9  ;;  %v1058_v5 = vmul.f32 %v3347_v57, %v1639_v35  ;;  %v1643_v43 = vld [vmem:[#allocation2 + $0x211] sm:$0xff] }
 0x17d   : > { %2462 = vmatmul.mubr.msk.f32.gmra.mrb[24].mxu1 %vm319_vm1, %v1750_v54  ;;  %v1193_v61 = vadd.f32 %v1161_v23, %v1089_v49  ;;  %v1162_v52 = vmul.f32 %v3356_v51, %v3523_v45  ;;  %v1712_v21 = vadd.f32 %v1680_v16, %v1608_v39  ;;  %v1369_v55 = vmul.f32 %v3364_v4, %v1640_v24 }
 0x17e   : > { %v1505_v34 = vadd.f32 %v1473_v31, %v1400_v38  ;;  %v1474_v36 = vmul.f32 %v3397_v2, %v1434_v10  ;;  %v1090_v6 = vadd.f32 %v1058_v5, %v986_v11  ;;  %v851_v40 = vmul.f32 %v3312_v37, %v3506_v7  ;;  %v1644_v38 = vld [vmem:[#allocation2 + $0x229] sm:$0xff] }
 0x17f   : > { %v1297_v13 = vadd.f32 %v1265_v20, %v1193_v61  ;;  %v955_v30 = vmul.f32 %v3323_v0, %v1536_v59  ;;  %v1751_v35 = vadd.f32 %v3467_v50, %v1712_v21  ;;  %v1266_v29 = vmul.f32 %v3384_v58, %v1537_v42 }
 0x180   : > { %v1609_v17 = vadd.f32 %v1577_v41, %v1505_v34  ;;  %v1059_v32 = vmul.f32 %v3347_v57, %v1640_v24  ;;  %v1194_v26 = vadd.f32 %v1162_v52, %v1090_v6  ;;  %v1163_v62 = vmul.f32 %v3356_v51, %v1434_v10  ;;  %v1540_v41 = vld [vmem:[#allocation2 + $0x228] sm:$0xff] }
 0x181   : > { %v1401_v18 = vadd.f32 %v1369_v55, %v1297_v13  ;;  %v987_v48 = vadd.f32 %v955_v30, %v851_v40  ;;  %2464 = vmatprep.mubr.msk.f32.mxu1 %vm319_vm1, %v1751_v35  ;;  %v1578_v7 = vmul.f32 %v3407_v19, %v1538_v33  ;;  %v1682_v59 = vmul.f32 %v3440_v56, %v1642_v60  ;;  %v1437_v52 = vld [vmem:[#allocation2 + $0x22f] sm:$0xff] }
 0x182   : > { %v1713_v63 = vadd.f32 %v1681_v15, %v1609_v17  ;;  %v1370_v16 = vmul.f32 %v3364_v4, %v3529_v8  ;;  %v1298_v27 = vadd.f32 %v1266_v29, %v1194_v26  ;;  %v1475_v24 = vmul.f32 %v3397_v2, %v1435_v1  ;;  %v1541_v55 = vld [vmem:[#allocation2 + $0x230] sm:$0xff] }
 0x183   : > { %v1506_v28 = vadd.f32 %v1474_v36, %v1401_v18  ;;  %v1091_v44 = vadd.f32 %v1059_v32, %v987_v48  ;;  %v1579_v3 = vmul.f32 %v3407_v19, %v1539_v53  ;;  %v852_v12 = vmul.f32 %v3312_v37, %v3523_v45  ;;  %v1645_v40 = vld [vmem:[#allocation2 + $0x231] sm:$0xff] }
 0x184   : > { %v1752_v25 = vadd.f32 %v3467_v50, %v1713_v63  ;;  %v956_v46 = vmul.f32 %v3323_v0, %v1537_v42  ;;  %v1402_v14 = vadd.f32 %v1370_v16, %v1298_v27  ;;  %v1267_v9 = vmul.f32 %v3384_v58, %v1538_v33 }
 0x185   : > { %v1610_v23 = vadd.f32 %v1578_v7, %v1506_v28  ;;  %v1195_v31 = vadd.f32 %v1163_v62, %v1091_v44  ;;  %v1371_v54 = vmul.f32 %v3364_v4, %v1642_v60  ;;  %v1060_v10 = vmul.f32 %v3347_v57, %v3529_v8 }
 0x186   : > { %2465 = vmatmul.mubr.msk.f32.gmra.mrb[26].mxu1 %vm319_vm1, %v1752_v25  ;;  %v988_v49 = vadd.f32 %v956_v46, %v852_v12  ;;  %v1164_v47 = vmul.f32 %v3356_v51, %v1435_v1  ;;  %v1507_v45 = vadd.f32 %v1475_v24, %v1402_v14  ;;  %v1476_v42 = vmul.f32 %v3397_v2, %v1436_v22 }
 0x187   : > { %v1714_v37 = vadd.f32 %v1682_v59, %v1610_v23  ;;  %v1299_v0 = vadd.f32 %v1267_v9, %v1195_v31  ;;  %v1683_v39 = vmul.f32 %v3440_v56, %v1643_v43  ;;  %v1580_v5 = vmul.f32 %v3407_v19, %v1540_v41 }
 0x188   : > { %v1092_v15 = vadd.f32 %v1060_v10, %v988_v49  ;;  %v1611_v61 = vadd.f32 %v1579_v3, %v1507_v45  ;;  %v1268_v57 = vmul.f32 %v3384_v58, %v1539_v53  ;;  %v1684_v34 = vmul.f32 %v3440_v56, %v1644_v38 }
 0x189   : > { %v1753_v20 = vadd.f32 %v3467_v50, %v1714_v37  ;;  %v1403_v11 = vadd.f32 %v1371_v54, %v1299_v0  ;;  %v1372_v13 = vmul.f32 %v3364_v4, %v1643_v43  ;;  %v1477_v33 = vmul.f32 %v3397_v2, %v1437_v52 }
 0x18a   : > { %v1196_v21 = vadd.f32 %v1164_v47, %v1092_v15  ;;  %v1715_v51 = vadd.f32 %v1683_v39, %v1611_v61  ;;  %v1581_v58 = vmul.f32 %v3407_v19, %v1541_v55  ;;  %v1685_v29 = vmul.f32 %v3440_v56, %v1645_v40  ;;  %v3594_v19 = vld [vmem:[%s3708_s6] ss:$0 sm:$0xff] }
 0x18b   : > { %2467 = vmatprep.mubr.msk.f32.mxu1 %vm319_vm1, %v1753_v20  ;;  %v1508_v8 = vadd.f32 %v1476_v42, %v1403_v11 }
 0x18c   : > { %v1300_v36 = vadd.f32 %v1268_v57, %v1196_v21  ;;  %v1754_v60 = vadd.f32 %v3467_v50, %v1715_v51 }
 0x18d   : > { %v1612_v6 = vadd.f32 %v1580_v5, %v1508_v8 }
 0x18e   : > { %v1404_v30 = vadd.f32 %v1372_v13, %v1300_v36  ;;  %2468 = vmatmul.mubr.msk.f32.gmra.mrb[28].mxu1 %vm319_vm1, %v1754_v60 }
 0x18f   : > { %v1716_v35 = vadd.f32 %v1684_v34, %v1612_v6 }
 0x190   : > { %v1509_v17 = vadd.f32 %v1477_v33, %v1404_v30 }
 0x191   : > { %v1755_v1 = vadd.f32 %v3467_v50, %v1716_v35 }
 0x192   : > { %v1613_v32 = vadd.f32 %v1581_v58, %v1509_v17 }
 0x193   : > { %2470 = vmatprep.mubr.msk.f32.mxu1 %vm319_vm1, %v1755_v1 }
 0x194   : > { %v1717_v4 = vadd.f32 %v1685_v29, %v1613_v32 }
 0x196   : > { %v1756_v2 = vadd.f32 %v3467_v50, %v1717_v4 }
 0x198   : > { %2471 = vmatmul.mubr.msk.f32.gmra.mrb[30].mxu1 %vm319_vm1, %v1756_v2 }
 0x1d9   : > { %v2427_v18 = vpop.f32.mrb[0].mxu1 }
 0x1da   : > { %v1936_v26 = vadd.f32 %v2427_v18, %v3594_v19  ;;  %v1930_v53 = vpop.f32.mrb[1].mxu1 }
 0x1db   : > { %v1931_v56 = vadd.f32 %v3594_v19, %v1930_v53 }
 0x1dc   : > { %v2090_v50 = vmax.f32 %v1936_v26, 0.0 }
 0x1dd   : > { %v2089_v48 = vmax.f32 %v1931_v56, 0.0 }
 0x1de   : > { %2122 = vst.msk [vmem:[%s3602_s17 + $0x8] sm:$0xff] %vm319_vm1, %v2090_v50 }
 0x1df   : > { %2121 = vst.msk [vmem:[%s3602_s17] sm:$0xff] %vm319_vm1, %v2089_v48 }
 0x1e3   : > { %v2430_v62 = vpop.f32.mrb[2].mxu1 }
 0x1e4   : > { %v1946_v63 = vadd.f32 %v2430_v62, %v3594_v19  ;;  %v1940_v7 = vpop.f32.mrb[3].mxu1 }
 0x1e5   : > { %v1941_v59 = vadd.f32 %v3594_v19, %v1940_v7 }
 0x1e6   : > { %v2092_v16 = vmax.f32 %v1946_v63, 0.0 }
 0x1e7   : > { %v2091_v28 = vmax.f32 %v1941_v59, 0.0 }
 0x1e8   : > { %2124 = vst.msk [vmem:[%s3602_s17 + $0x18] sm:$0xff] %vm319_vm1, %v2092_v16 }
 0x1e9   : > { %2123 = vst.msk [vmem:[%s3602_s17 + $0x10] sm:$0xff] %vm319_vm1, %v2091_v28 }
 0x1f0   : > { %v2433_v27 = vpop.f32.mrb[4].mxu1 }
 0x1f1   : > { %v1956_v24 = vadd.f32 %v2433_v27, %v3594_v19  ;;  %v1950_v44 = vpop.f32.mrb[5].mxu1 }
 0x1f2   : > { %v1951_v25 = vadd.f32 %v3594_v19, %v1950_v44 }
 0x1f3   : > { %v2094_v3 = vmax.f32 %v1956_v24, 0.0 }
 0x1f4   : > { %v2093_v22 = vmax.f32 %v1951_v25, 0.0 }
 0x1f5   : > { %2126 = vst.msk [vmem:[%s3602_s17 + $0x28] sm:$0xff] %vm319_vm1, %v2094_v3 }
 0x1f6   : > { %2125 = vst.msk [vmem:[%s3602_s17 + $0x20] sm:$0xff] %vm319_vm1, %v2093_v22 }
 0x1fb   : > { %v2436_v12 = vpop.f32.mrb[6].mxu1 }
 0x1fc   : > { %v1966_v46 = vadd.f32 %v2436_v12, %v3594_v19  ;;  %v1960_v23 = vpop.f32.mrb[7].mxu1 }
 0x1fd   : > { %v1961_v14 = vadd.f32 %v3594_v19, %v1960_v23 }
 0x1fe   : > { %v2096_v43 = vmax.f32 %v1966_v46, 0.0 }
 0x1ff   : > { %v2095_v31 = vmax.f32 %v1961_v14, 0.0 }
 0x200   : > { %2128 = vst.msk [vmem:[%s3602_s17 + $0x38] sm:$0xff] %vm319_vm1, %v2096_v43 }
 0x201   : > { %2127 = vst.msk [vmem:[%s3602_s17 + $0x30] sm:$0xff] %vm319_vm1, %v2095_v31 }
 0x204   : > { %v2439_v9 = vpop.f32.mrb[8].mxu1 }
 0x205   : > { %v1976_v54 = vadd.f32 %v2439_v9, %v3594_v19  ;;  %v1970_v41 = vpop.f32.mrb[9].mxu1 }
 0x206   : > { %v1971_v49 = vadd.f32 %v3594_v19, %v1970_v41 }
 0x207   : > { %v2098_v10 = vmax.f32 %v1976_v54, 0.0 }
 0x208   : > { %v2097_v47 = vmax.f32 %v1971_v49, 0.0 }
 0x209   : > { %2130 = vst.msk [vmem:[%s3602_s17 + $0x48] sm:$0xff] %vm319_vm1, %v2098_v10 }
 0x20a   : > { %2129 = vst.msk [vmem:[%s3602_s17 + $0x40] sm:$0xff] %vm319_vm1, %v2097_v47 }
 0x20f   : > { %v2442_v37 = vpop.f32.mrb[10].mxu1 }
 0x210   : > { %v1986_v45 = vadd.f32 %v2442_v37, %v3594_v19  ;;  %v1980_v0 = vpop.f32.mrb[11].mxu1 }
 0x211   : > { %v1981_v42 = vadd.f32 %v3594_v19, %v1980_v0 }
 0x212   : > { %v2100_v39 = vmax.f32 %v1986_v45, 0.0 }
 0x213   : > { %v2099_v38 = vmax.f32 %v1981_v42, 0.0 }
 0x214   : > { %2132 = vst.msk [vmem:[%s3602_s17 + $0x58] sm:$0xff] %vm319_vm1, %v2100_v39 }
 0x215   : > { %2131 = vst.msk [vmem:[%s3602_s17 + $0x50] sm:$0xff] %vm319_vm1, %v2099_v38 }
 0x218   : > { %v2445_v15 = vpop.f32.mrb[12].mxu1 }
 0x219   : > { %v1996_v20 = vadd.f32 %v2445_v15, %v3594_v19  ;;  %v1990_v61 = vpop.f32.mrb[13].mxu1 }
 0x21a   : > { %v1991_v11 = vadd.f32 %v3594_v19, %v1990_v61 }
 0x21b   : > { %v2102_v5 = vmax.f32 %v1996_v20, 0.0 }
 0x21c   : > { %v2101_v52 = vmax.f32 %v1991_v11, 0.0 }
 0x21d   : > { %2134 = vst.msk [vmem:[%s3602_s17 + $0x68] sm:$0xff] %vm319_vm1, %v2102_v5 }
 0x21e   : > { %2133 = vst.msk [vmem:[%s3602_s17 + $0x60] sm:$0xff] %vm319_vm1, %v2101_v52 }
 0x223   : > { %v2448_v21 = vpop.f32.mrb[14].mxu1 }
 0x224   : > { %v2006_v57 = vadd.f32 %v2448_v21, %v3594_v19  ;;  %v2000_v51 = vpop.f32.mrb[15].mxu1 }
 0x225   : > { %v2001_v8 = vadd.f32 %v3594_v19, %v2000_v51 }
 0x226   : > { %v2104_v34 = vmax.f32 %v2006_v57, 0.0 }
 0x227   : > { %v2103_v55 = vmax.f32 %v2001_v8, 0.0 }
 0x228   : > { %2136 = vst.msk [vmem:[%s3602_s17 + $0x78] sm:$0xff] %vm319_vm1, %v2104_v34 }
 0x229   : > { %2135 = vst.msk [vmem:[%s3602_s17 + $0x70] sm:$0xff] %vm319_vm1, %v2103_v55 }
 0x22c   : > { %v2451_v36 = vpop.f32.mrb[16].mxu1 }
 0x22d   : > { %v2016_v13 = vadd.f32 %v2451_v36, %v3594_v19  ;;  %v2010_v33 = vpop.f32.mrb[17].mxu1 }
 0x22e   : > { %v2011_v60 = vadd.f32 %v3594_v19, %v2010_v33 }
 0x22f   : > { %v2106_v6 = vmax.f32 %v2016_v13, 0.0 }
 0x230   : > { %v2105_v40 = vmax.f32 %v2011_v60, 0.0 }
 0x231   : > { %2138 = vst.msk [vmem:[%s3602_s17 + $0x88] sm:$0xff] %vm319_vm1, %v2106_v6 }
 0x232   : > { %2137 = vst.msk [vmem:[%s3602_s17 + $0x80] sm:$0xff] %vm319_vm1, %v2105_v40 }
 0x235   : > { %v2454_v30 = vpop.f32.mrb[18].mxu1 }
 0x236   : > { %v2026_v58 = vadd.f32 %v2454_v30, %v3594_v19  ;;  %v2020_v35 = vpop.f32.mrb[19].mxu1 }
 0x237   : > { %v2021_v17 = vadd.f32 %v3594_v19, %v2020_v35 }
 0x238   : > { %v2108_v29 = vmax.f32 %v2026_v58, 0.0 }
 0x239   : > { %v2107_v1 = vmax.f32 %v2021_v17, 0.0 }
 0x23a   : > { %2140 = vst.msk [vmem:[%s3602_s17 + $0x98] sm:$0xff] %vm319_vm1, %v2108_v29 }
 0x23b   : > { %2139 = vst.msk [vmem:[%s3602_s17 + $0x90] sm:$0xff] %vm319_vm1, %v2107_v1 }
 0x23d   : > { %v2457_v32 = vpop.f32.mrb[20].mxu1 }
 0x23e   : > { %v2036_v4 = vadd.f32 %v2457_v32, %v3594_v19  ;;  %v2030_v2 = vpop.f32.mrb[21].mxu1 }
 0x23f   : > { %v2031_v18 = vadd.f32 %v3594_v19, %v2030_v2 }
 0x240   : > { %v2110_v26 = vmax.f32 %v2036_v4, 0.0 }
 0x241   : > { %v2109_v53 = vmax.f32 %v2031_v18, 0.0 }
 0x242   : > { %2142 = vst.msk [vmem:[%s3602_s17 + $0xa8] sm:$0xff] %vm319_vm1, %v2110_v26 }
 0x243   : > { %2141 = vst.msk [vmem:[%s3602_s17 + $0xa0] sm:$0xff] %vm319_vm1, %v2109_v53 }
 0x247   : > { %v2460_v56 = vpop.f32.mrb[22].mxu1 }
 0x248   : > { %v2046_v50 = vadd.f32 %v2460_v56, %v3594_v19  ;;  %v2040_v48 = vpop.f32.mrb[23].mxu1 }
 0x249   : > { %v2041_v62 = vadd.f32 %v3594_v19, %v2040_v48 }
 0x24a   : > { %v2112_v63 = vmax.f32 %v2046_v50, 0.0 }
 0x24b   : > { %v2111_v7 = vmax.f32 %v2041_v62, 0.0 }
 0x24c   : > { %2144 = vst.msk [vmem:[%s3602_s17 + $0xb8] sm:$0xff] %vm319_vm1, %v2112_v63 }
 0x24d   : > { %2143 = vst.msk [vmem:[%s3602_s17 + $0xb0] sm:$0xff] %vm319_vm1, %v2111_v7 }
 0x250   : > { %v2463_v59 = vpop.f32.mrb[24].mxu1 }
 0x251   : > { %v2056_v16 = vadd.f32 %v2463_v59, %v3594_v19  ;;  %v2050_v28 = vpop.f32.mrb[25].mxu1 }
 0x252   : > { %v2051_v27 = vadd.f32 %v3594_v19, %v2050_v28 }
 0x253   : > { %v2114_v24 = vmax.f32 %v2056_v16, 0.0 }
 0x254   : > { %v2113_v44 = vmax.f32 %v2051_v27, 0.0 }
 0x255   : > { %2146 = vst.msk [vmem:[%s3602_s17 + $0xc8] sm:$0xff] %vm319_vm1, %v2114_v24 }
 0x256   : > { %2145 = vst.msk [vmem:[%s3602_s17 + $0xc0] sm:$0xff] %vm319_vm1, %v2113_v44 }
 0x259   : > { %v2466_v25 = vpop.f32.mrb[26].mxu1 }
 0x25a   : > { %v2066_v3 = vadd.f32 %v2466_v25, %v3594_v19  ;;  %v2060_v22 = vpop.f32.mrb[27].mxu1 }
 0x25b   : > { %v2061_v12 = vadd.f32 %v3594_v19, %v2060_v22 }
 0x25c   : > { %v2116_v46 = vmax.f32 %v2066_v3, 0.0 }
 0x25d   : > { %v2115_v23 = vmax.f32 %v2061_v12, 0.0 }
 0x25e   : > { %2148 = vst.msk [vmem:[%s3602_s17 + $0xd8] sm:$0xff] %vm319_vm1, %v2116_v46 }
 0x25f   : > { %2147 = vst.msk [vmem:[%s3602_s17 + $0xd0] sm:$0xff] %vm319_vm1, %v2115_v23 }
 0x261   : > { %v2469_v14 = vpop.f32.mrb[28].mxu1 }
 0x262   : > { %v2076_v43 = vadd.f32 %v2469_v14, %v3594_v19  ;;  %v2070_v31 = vpop.f32.mrb[29].mxu1 }
 0x263   : > { %v2071_v9 = vadd.f32 %v3594_v19, %v2070_v31 }
 0x264   : > { %v2118_v54 = vmax.f32 %v2076_v43, 0.0 }
 0x265   : > { %v2117_v41 = vmax.f32 %v2071_v9, 0.0 }
 0x266   : > { %2150 = vst.msk [vmem:[%s3602_s17 + $0xe8] sm:$0xff] %vm319_vm1, %v2118_v54 }
 0x267   : > { %2149 = vst.msk [vmem:[%s3602_s17 + $0xe0] sm:$0xff] %vm319_vm1, %v2117_v41 }
 0x26b   : > { %v2472_v49 = vpop.f32.mrb[30].mxu1 }
 0x26c   : > { %v2086_v10 = vadd.f32 %v2472_v49, %v3594_v19  ;;  %v2080_v47 = vpop.f32.mrb[31].mxu1 }
 0x26d   : > { %v2081_v37 = vadd.f32 %v3594_v19, %v2080_v47 }
 0x26e   : > { %v2120_v45 = vmax.f32 %v2086_v10, 0.0 }
 0x26f   : > { %v2119_v0 = vmax.f32 %v2081_v37, 0.0 }
 0x270   : > { %2152 = vst.msk [vmem:[%s3602_s17 + $0xf8] sm:$0xff] %vm319_vm1, %v2120_v45 }
 0x271   : > { %2151 = vst.msk [vmem:[%s3602_s17 + $0xf0] sm:$0xff] %vm319_vm1, %v2119_v0 }
 0x272 PF: > { %s17_s24 = sadd.s32 1, %s2498_s24  }
 0x273   : > { %p14_p4 = scmp.ge.s32.totalorder %s17_s24, 4  }
 0x275   :  { %16 = sbr.rel (!%p14_p4) target bundleno = 1 (0x1), region = 88 }

</bundles_post_ra>
